<compile_context>
chip_gen: v5e
topology: v5e:2x2
jax: 0.10.0
libtpu: 0.0.40
codegen_flags: <defaults>
</compile_context>

<pallas_src>
import functools

import jax
import jax.numpy as jnp
from jax.experimental import pallas as pl
from jax.experimental.pallas import tpu as pltpu


def _silu(x):
    # x * sigmoid(x); sigmoid expressed via tanh so the transcendental lands on the
    # EUP slot and there is no VPU divide and no exp(-x) overflow intermediate.
    return 0.5 * x * (jnp.tanh(0.5 * x) + 1.0)


# ---------------------------------------------------------------------------
# Fused kernel: cv1 -> grouped depthwise (3x3 | 5x5) -> concat -> conv1x1
# All tensors are channel-major: (C, HW) with HW on the lane axis.
# ---------------------------------------------------------------------------
def _msgconv_kernel(x_ref, w1t_ref, b1_ref, wdw_ref, bdw_ref, mask_ref,
                    wot_ref, bo_ref, o_ref, *, W, R):
    x = x_ref[0]                                   # (c1, HW)
    c1 = x.shape[0]
    HW = x.shape[1]
    min_ch = w1t_ref.shape[0]
    c2 = wot_ref.shape[0]

    # ---- cv1: 1x1 conv (+folded BN) + SiLU, as a K-deep VPU broadcast FMA ----
    w1t = w1t_ref[...]                             # (min_ch, c1)
    acc = jnp.zeros((min_ch, HW), jnp.float32)
    for k in range(c1):
        acc = acc + w1t[:, k:k + 1] * x[k:k + 1, :]
    x1 = _silu(acc + b1_ref[...])                  # (min_ch, HW)

    # ---- grouped depthwise 3x3 / 5x5 as one 25-tap pass over all min_ch chans ----
    # tap (oy, ox): value at output p comes from flat position p + oy*W + ox,
    # realized as an XLU roll of the flattened activation; wrap/row-crossing
    # contributions are zeroed by the precomputed 'same'-padding mask.
    wdw = wdw_ref[...]                             # (min_ch, 25) per-channel taps
    dw = jnp.zeros((min_ch, HW), jnp.float32)
    t = 0
    for oy in range(-R, R + 1):
        for ox in range(-R, R + 1):
            delta = oy * W + ox
            shifted = x1 if delta == 0 else pltpu.roll(x1, (-delta) % HW, 1)
            dw = dw + (shifted * mask_ref[t:t + 1, :]) * wdw[:, t:t + 1]
            t += 1
    dw = _silu(dw + bdw_ref[...])                  # (min_ch, HW), [d3 ; d5] stacked

    # ---- concat([x1, d3, d5]) + conv1x1 + SiLU, as split broadcast FMAs ----
    wot = wot_ref[...]                             # (c2, c2) = W1x1^T
    out = jnp.zeros((c2, HW), jnp.float32)
    for k in range(min_ch):
        out = out + wot[:, k:k + 1] * x1[k:k + 1, :]
    for k in range(min_ch):
        out = out + wot[:, min_ch + k:min_ch + k + 1] * dw[k:k + 1, :]
    o_ref[0] = _silu(out + bo_ref[...])


# ---------------------------------------------------------------------------
# Wrapper: takes PyTorch-style NCHW input directly (that IS the lane-dense layout)
# ---------------------------------------------------------------------------
def msgconv_forward(x_nchw, params):
    W1, b1, w3, b3, w5, b5, W1x1, bo = params
    N, C1, H, W_ = x_nchw.shape
    min_ch = W1.shape[1]
    ch = min_ch // 2
    c2 = W1x1.shape[1]
    HW = H * W_
    R = 2                           # radius of the larger (5x5) depthwise kernel
    KK = (2 * R + 1) ** 2           # 25 taps

    # TODO(synk): HW here (256) is a multiple of 128; at odd spatial sizes the lane
    # axis would need padding to the next multiple of 128.
    x_flat = x_nchw.reshape(N, C1, HW)

    # channel-major (transposed) pointwise weights
    W1T = jnp.asarray(W1).T                                   # (min_ch, C1)
    WoT = jnp.asarray(W1x1).T                                 # (c2, c2)

    # combined per-channel depthwise weights on a single 5x5 tap grid:
    # group 0 (first ch channels) gets the 3x3 kernel zero-embedded in the center,
    # group 1 (last ch channels) gets the 5x5 kernel.
    w3_cm = jnp.transpose(w3, (2, 0, 1))                      # (ch, 3, 3)
    w5_cm = jnp.transpose(w5, (2, 0, 1))                      # (ch, 5, 5)
    w3_emb = jnp.pad(w3_cm, ((0, 0), (1, 1), (1, 1)))         # (ch, 5, 5)
    wdw = jnp.concatenate(
        [w3_emb.reshape(ch, KK), w5_cm.reshape(ch, KK)], axis=0)  # (min_ch, 25)
    bdw = jnp.concatenate([b3, b5]).reshape(min_ch, 1)

    # per-tap 'same' zero-padding validity masks, flattened over HW
    yy = jnp.arange(H).reshape(H, 1)
    xx = jnp.arange(W_).reshape(1, W_)
    masks = []
    for oy in range(-R, R + 1):
        for ox in range(-R, R + 1):
            valid = ((yy + oy >= 0) & (yy + oy < H) &
                     (xx + ox >= 0) & (xx + ox < W_))
            masks.append(valid.reshape(HW))
    masks = jnp.stack(masks).astype(jnp.float32)              # (25, HW)

    kernel = functools.partial(_msgconv_kernel, W=W_, R=R)
    out_flat = pl.pallas_call(
        kernel,
        out_shape=jax.ShapeDtypeStruct((N, c2, HW), jnp.float32),
        grid=(N,),
        in_specs=[
            pl.BlockSpec((1, C1, HW), lambda b: (b, 0, 0)),
            pl.BlockSpec((min_ch, C1), lambda b: (0, 0)),
            pl.BlockSpec((min_ch, 1), lambda b: (0, 0)),
            pl.BlockSpec((min_ch, KK), lambda b: (0, 0)),
            pl.BlockSpec((min_ch, 1), lambda b: (0, 0)),
            pl.BlockSpec((KK, HW), lambda b: (0, 0)),
            pl.BlockSpec((c2, c2), lambda b: (0, 0)),
            pl.BlockSpec((c2, 1), lambda b: (0, 0)),
        ],
        out_specs=pl.BlockSpec((1, c2, HW), lambda b: (b, 0, 0)),
        compiler_params=pltpu.CompilerParams(dimension_semantics=("parallel",)),
    )(x_flat, W1T, b1.reshape(min_ch, 1), wdw, bdw, masks, WoT,
      bo.reshape(c2, 1))

    return out_flat.reshape(N, c2, H, W_)


# ---------------------------------------------------------------------------
# Pure-JAX reference (lax.conv) for correctness checking
# ---------------------------------------------------------------------------
def _ref_forward(x_nchw, params):
    W1, b1, w3, b3, w5, b5, W1x1, bo = params
    silu = lambda v: v * jax.nn.sigmoid(v)

    def conv(x, w4, b, groups=1):
        y = jax.lax.conv_general_dilated(
            x, w4, (1, 1), "SAME",
            dimension_numbers=("NCHW", "HWIO", "NCHW"),
            feature_group_count=groups)
        return y + b.reshape(1, -1, 1, 1)

    min_ch = W1.shape[1]
    ch = min_ch // 2
    x1 = silu(conv(x_nchw, W1.reshape(1, 1, *W1.shape), b1))
    g0, g1 = x1[:, :ch], x1[:, ch:]
    d3 = silu(conv(g0, w3.reshape(3, 3, 1, ch), b3, groups=ch))
    d5 = silu(conv(g1, w5.reshape(5, 5, 1, ch), b5, groups=ch))
    cat = jnp.concatenate([x1, d3, d5], axis=1)
    out = silu(conv(cat, W1x1.reshape(1, 1, *W1x1.shape), bo))
    return out


if __name__ == "__main__":
    # MSGConv(c1=8, c2=8, k=1, s=1, kernels=[3, 5]):
    #   cv1: Conv(8, 4, 1)                    -> W1 (8,4), b1 (4,)
    #   convs[0]: Conv(2, 2, k=3, g=2)        -> w3 (3,3,2), b3 (2,)
    #   convs[1]: Conv(2, 2, k=5, g=2)        -> w5 (5,5,2), b5 (2,)
    #   conv1x1: Conv(8, 8, 1)                -> W1x1 (8,8), bo (8,)
    # BN is in eval mode and folded into each conv's weight/bias (synthetic params).
    c1, c2 = 8, 8
    min_ch = c2 // 2           # 4
    ch = min_ch // 2           # 2
    N, H, W_ = 2, 16, 16

    key = jax.random.PRNGKey(0)
    ks = jax.random.split(key, 9)
    init = lambda k, shape, s=0.3: s * jax.random.normal(k, shape, jnp.float32)

    params = (
        init(ks[0], (c1, min_ch)),   # W1
        init(ks[1], (min_ch,)),      # b1
        init(ks[2], (3, 3, ch)),     # w3 (depthwise)
        init(ks[3], (ch,)),          # b3
        init(ks[4], (5, 5, ch)),     # w5 (depthwise)
        init(ks[5], (ch,)),          # b5
        init(ks[6], (c2, c2)),       # W1x1
        init(ks[7], (c2,)),          # bo
    )

    x_nchw = jax.random.normal(ks[8], (N, c1, H, W_), jnp.float32)   # PyTorch layout

    out = msgconv_forward(x_nchw, params)
    jax.block_until_ready(out)

    ref = _ref_forward(x_nchw, params)
    assert out.shape == (N, c2, H, W_)
    if not bool(jnp.allclose(out, ref, atol=1e-4, rtol=1e-4)):
        raise AssertionError("Pallas output does not match JAX reference")
    print("KERNEL_OK")
</pallas_src>

<mosaic_0001>
module attributes {stable_mosaic.version = 11 : i64} {
  func.func @_msgconv_kernel(%arg0: i32, %arg1: memref<1x8x256xf32, #tpu.memory_space<vmem>>, %arg2: memref<4x8xf32, #tpu.memory_space<vmem>>, %arg3: memref<4x1xf32, #tpu.memory_space<vmem>>, %arg4: memref<4x25xf32, #tpu.memory_space<vmem>>, %arg5: memref<4x1xf32, #tpu.memory_space<vmem>>, %arg6: memref<25x256xf32, #tpu.memory_space<vmem>>, %arg7: memref<8x8xf32, #tpu.memory_space<vmem>>, %arg8: memref<8x1xf32, #tpu.memory_space<vmem>>, %arg9: memref<1x8x256xf32, #tpu.memory_space<vmem>>) attributes {dimension_semantics = [#tpu.dimension_semantics<parallel>], iteration_bounds = array<i64: 2>, scalar_prefetch = 0 : i64, scratch_operands = 0 : i64, tpu.core_type = #tpu.core_type<tc>, window_params = [{transform_indices = @transform_0, window_bounds = array<i64: 1, 8, 256>}, {pipeline_mode = #tpu.pipeline_mode<synchronous>, transform_indices = @transform_1, window_bounds = array<i64: 4, 8>}, {pipeline_mode = #tpu.pipeline_mode<synchronous>, transform_indices = @transform_2, window_bounds = array<i64: 4, 1>}, {pipeline_mode = #tpu.pipeline_mode<synchronous>, transform_indices = @transform_3, window_bounds = array<i64: 4, 25>}, {pipeline_mode = #tpu.pipeline_mode<synchronous>, transform_indices = @transform_4, window_bounds = array<i64: 4, 1>}, {pipeline_mode = #tpu.pipeline_mode<synchronous>, transform_indices = @transform_5, window_bounds = array<i64: 25, 256>}, {pipeline_mode = #tpu.pipeline_mode<synchronous>, transform_indices = @transform_6, window_bounds = array<i64: 8, 8>}, {pipeline_mode = #tpu.pipeline_mode<synchronous>, transform_indices = @transform_7, window_bounds = array<i64: 8, 1>}, {transform_indices = @transform_8, window_bounds = array<i64: 1, 8, 256>}]} {
    %c0 = arith.constant 0 : index
    %c0_0 = arith.constant 0 : index
    %c0_1 = arith.constant 0 : index
    %0 = vector.load %arg1[%c0, %c0_0, %c0_1] : memref<1x8x256xf32, #tpu.memory_space<vmem>>, vector<1x8x256xf32>
    %1 = vector.shape_cast %0 : vector<1x8x256xf32> to vector<8x256xf32>
    %c0_2 = arith.constant 0 : index
    %c0_3 = arith.constant 0 : index
    %2 = vector.load %arg2[%c0_2, %c0_3] : memref<4x8xf32, #tpu.memory_space<vmem>>, vector<4x8xf32>
    %cst = arith.constant 0.000000e+00 : f32
    %3 = vector.broadcast %cst : f32 to vector<4x256xf32>
    %4 = vector.extract_strided_slice %2 {offsets = [0, 0], sizes = [4, 1], strides = [1, 1]} : vector<4x8xf32> to vector<4x1xf32>
    %5 = vector.extract_strided_slice %1 {offsets = [0, 0], sizes = [1, 256], strides = [1, 1]} : vector<8x256xf32> to vector<1x256xf32>
    %6 = vector.broadcast %4 : vector<4x1xf32> to vector<4x256xf32>
    %7 = vector.broadcast %5 : vector<1x256xf32> to vector<4x256xf32>
    %8 = arith.mulf %6, %7 : vector<4x256xf32>
    %9 = arith.addf %3, %8 : vector<4x256xf32>
    %10 = vector.extract_strided_slice %2 {offsets = [0, 1], sizes = [4, 1], strides = [1, 1]} : vector<4x8xf32> to vector<4x1xf32>
    %11 = vector.extract_strided_slice %1 {offsets = [1, 0], sizes = [1, 256], strides = [1, 1]} : vector<8x256xf32> to vector<1x256xf32>
    %12 = vector.broadcast %10 : vector<4x1xf32> to vector<4x256xf32>
    %13 = vector.broadcast %11 : vector<1x256xf32> to vector<4x256xf32>
    %14 = arith.mulf %12, %13 : vector<4x256xf32>
    %15 = arith.addf %9, %14 : vector<4x256xf32>
    %16 = vector.extract_strided_slice %2 {offsets = [0, 2], sizes = [4, 1], strides = [1, 1]} : vector<4x8xf32> to vector<4x1xf32>
    %17 = vector.extract_strided_slice %1 {offsets = [2, 0], sizes = [1, 256], strides = [1, 1]} : vector<8x256xf32> to vector<1x256xf32>
    %18 = vector.broadcast %16 : vector<4x1xf32> to vector<4x256xf32>
    %19 = vector.broadcast %17 : vector<1x256xf32> to vector<4x256xf32>
    %20 = arith.mulf %18, %19 : vector<4x256xf32>
    %21 = arith.addf %15, %20 : vector<4x256xf32>
    %22 = vector.extract_strided_slice %2 {offsets = [0, 3], sizes = [4, 1], strides = [1, 1]} : vector<4x8xf32> to vector<4x1xf32>
    %23 = vector.extract_strided_slice %1 {offsets = [3, 0], sizes = [1, 256], strides = [1, 1]} : vector<8x256xf32> to vector<1x256xf32>
    %24 = vector.broadcast %22 : vector<4x1xf32> to vector<4x256xf32>
    %25 = vector.broadcast %23 : vector<1x256xf32> to vector<4x256xf32>
    %26 = arith.mulf %24, %25 : vector<4x256xf32>
    %27 = arith.addf %21, %26 : vector<4x256xf32>
    %28 = vector.extract_strided_slice %2 {offsets = [0, 4], sizes = [4, 1], strides = [1, 1]} : vector<4x8xf32> to vector<4x1xf32>
    %29 = vector.extract_strided_slice %1 {offsets = [4, 0], sizes = [1, 256], strides = [1, 1]} : vector<8x256xf32> to vector<1x256xf32>
    %30 = vector.broadcast %28 : vector<4x1xf32> to vector<4x256xf32>
    %31 = vector.broadcast %29 : vector<1x256xf32> to vector<4x256xf32>
    %32 = arith.mulf %30, %31 : vector<4x256xf32>
    %33 = arith.addf %27, %32 : vector<4x256xf32>
    %34 = vector.extract_strided_slice %2 {offsets = [0, 5], sizes = [4, 1], strides = [1, 1]} : vector<4x8xf32> to vector<4x1xf32>
    %35 = vector.extract_strided_slice %1 {offsets = [5, 0], sizes = [1, 256], strides = [1, 1]} : vector<8x256xf32> to vector<1x256xf32>
    %36 = vector.broadcast %34 : vector<4x1xf32> to vector<4x256xf32>
    %37 = vector.broadcast %35 : vector<1x256xf32> to vector<4x256xf32>
    %38 = arith.mulf %36, %37 : vector<4x256xf32>
    %39 = arith.addf %33, %38 : vector<4x256xf32>
    %40 = vector.extract_strided_slice %2 {offsets = [0, 6], sizes = [4, 1], strides = [1, 1]} : vector<4x8xf32> to vector<4x1xf32>
    %41 = vector.extract_strided_slice %1 {offsets = [6, 0], sizes = [1, 256], strides = [1, 1]} : vector<8x256xf32> to vector<1x256xf32>
    %42 = vector.broadcast %40 : vector<4x1xf32> to vector<4x256xf32>
    %43 = vector.broadcast %41 : vector<1x256xf32> to vector<4x256xf32>
    %44 = arith.mulf %42, %43 : vector<4x256xf32>
    %45 = arith.addf %39, %44 : vector<4x256xf32>
    %46 = vector.extract_strided_slice %2 {offsets = [0, 7], sizes = [4, 1], strides = [1, 1]} : vector<4x8xf32> to vector<4x1xf32>
    %47 = vector.extract_strided_slice %1 {offsets = [7, 0], sizes = [1, 256], strides = [1, 1]} : vector<8x256xf32> to vector<1x256xf32>
    %48 = vector.broadcast %46 : vector<4x1xf32> to vector<4x256xf32>
    %49 = vector.broadcast %47 : vector<1x256xf32> to vector<4x256xf32>
    %50 = arith.mulf %48, %49 : vector<4x256xf32>
    %51 = arith.addf %45, %50 : vector<4x256xf32>
    %c0_4 = arith.constant 0 : index
    %c0_5 = arith.constant 0 : index
    %52 = vector.load %arg3[%c0_4, %c0_5] : memref<4x1xf32, #tpu.memory_space<vmem>>, vector<4x1xf32>
    %53 = vector.broadcast %52 : vector<4x1xf32> to vector<4x256xf32>
    %54 = arith.addf %51, %53 : vector<4x256xf32>
    %cst_6 = arith.constant 5.000000e-01 : f32
    %55 = vector.broadcast %cst_6 : f32 to vector<4x256xf32>
    %56 = arith.mulf %55, %54 : vector<4x256xf32>
    %cst_7 = arith.constant 5.000000e-01 : f32
    %57 = vector.broadcast %cst_7 : f32 to vector<4x256xf32>
    %58 = arith.mulf %57, %54 : vector<4x256xf32>
    %59 = math.tanh %58 : vector<4x256xf32>
    %cst_8 = arith.constant 1.000000e+00 : f32
    %60 = vector.broadcast %cst_8 : f32 to vector<4x256xf32>
    %61 = arith.addf %59, %60 : vector<4x256xf32>
    %62 = arith.mulf %56, %61 : vector<4x256xf32>
    %c0_9 = arith.constant 0 : index
    %c0_10 = arith.constant 0 : index
    %63 = vector.load %arg4[%c0_9, %c0_10] : memref<4x25xf32, #tpu.memory_space<vmem>>, vector<4x25xf32>
    %cst_11 = arith.constant 0.000000e+00 : f32
    %64 = vector.broadcast %cst_11 : f32 to vector<4x256xf32>
    %c34_i32 = arith.constant 34 : i32
    %65 = tpu.dynamic_rotate %62 by %c34_i32 dim 1 : vector<4x256xf32>, i32 -> vector<4x256xf32>
    %c0_12 = arith.constant 0 : index
    %c0_13 = arith.constant 0 : index
    %66 = vector.load %arg6[%c0_12, %c0_13] : memref<25x256xf32, #tpu.memory_space<vmem>>, vector<1x256xf32>
    %67 = vector.broadcast %66 : vector<1x256xf32> to vector<4x256xf32>
    %68 = arith.mulf %65, %67 : vector<4x256xf32>
    %69 = vector.extract_strided_slice %63 {offsets = [0, 0], sizes = [4, 1], strides = [1, 1]} : vector<4x25xf32> to vector<4x1xf32>
    %70 = vector.broadcast %69 : vector<4x1xf32> to vector<4x256xf32>
    %71 = arith.mulf %68, %70 : vector<4x256xf32>
    %72 = arith.addf %64, %71 : vector<4x256xf32>
    %c33_i32 = arith.constant 33 : i32
    %73 = tpu.dynamic_rotate %62 by %c33_i32 dim 1 : vector<4x256xf32>, i32 -> vector<4x256xf32>
    %c1 = arith.constant 1 : index
    %c0_14 = arith.constant 0 : index
    %74 = vector.load %arg6[%c1, %c0_14] : memref<25x256xf32, #tpu.memory_space<vmem>>, vector<1x256xf32>
    %75 = vector.broadcast %74 : vector<1x256xf32> to vector<4x256xf32>
    %76 = arith.mulf %73, %75 : vector<4x256xf32>
    %77 = vector.extract_strided_slice %63 {offsets = [0, 1], sizes = [4, 1], strides = [1, 1]} : vector<4x25xf32> to vector<4x1xf32>
    %78 = vector.broadcast %77 : vector<4x1xf32> to vector<4x256xf32>
    %79 = arith.mulf %76, %78 : vector<4x256xf32>
    %80 = arith.addf %72, %79 : vector<4x256xf32>
    %c32_i32 = arith.constant 32 : i32
    %81 = tpu.dynamic_rotate %62 by %c32_i32 dim 1 : vector<4x256xf32>, i32 -> vector<4x256xf32>
    %c2 = arith.constant 2 : index
    %c0_15 = arith.constant 0 : index
    %82 = vector.load %arg6[%c2, %c0_15] : memref<25x256xf32, #tpu.memory_space<vmem>>, vector<1x256xf32>
    %83 = vector.broadcast %82 : vector<1x256xf32> to vector<4x256xf32>
    %84 = arith.mulf %81, %83 : vector<4x256xf32>
    %85 = vector.extract_strided_slice %63 {offsets = [0, 2], sizes = [4, 1], strides = [1, 1]} : vector<4x25xf32> to vector<4x1xf32>
    %86 = vector.broadcast %85 : vector<4x1xf32> to vector<4x256xf32>
    %87 = arith.mulf %84, %86 : vector<4x256xf32>
    %88 = arith.addf %80, %87 : vector<4x256xf32>
    %c31_i32 = arith.constant 31 : i32
    %89 = tpu.dynamic_rotate %62 by %c31_i32 dim 1 : vector<4x256xf32>, i32 -> vector<4x256xf32>
    %c3 = arith.constant 3 : index
    %c0_16 = arith.constant 0 : index
    %90 = vector.load %arg6[%c3, %c0_16] : memref<25x256xf32, #tpu.memory_space<vmem>>, vector<1x256xf32>
    %91 = vector.broadcast %90 : vector<1x256xf32> to vector<4x256xf32>
    %92 = arith.mulf %89, %91 : vector<4x256xf32>
    %93 = vector.extract_strided_slice %63 {offsets = [0, 3], sizes = [4, 1], strides = [1, 1]} : vector<4x25xf32> to vector<4x1xf32>
    %94 = vector.broadcast %93 : vector<4x1xf32> to vector<4x256xf32>
    %95 = arith.mulf %92, %94 : vector<4x256xf32>
    %96 = arith.addf %88, %95 : vector<4x256xf32>
    %c30_i32 = arith.constant 30 : i32
    %97 = tpu.dynamic_rotate %62 by %c30_i32 dim 1 : vector<4x256xf32>, i32 -> vector<4x256xf32>
    %c4 = arith.constant 4 : index
    %c0_17 = arith.constant 0 : index
    %98 = vector.load %arg6[%c4, %c0_17] : memref<25x256xf32, #tpu.memory_space<vmem>>, vector<1x256xf32>
    %99 = vector.broadcast %98 : vector<1x256xf32> to vector<4x256xf32>
    %100 = arith.mulf %97, %99 : vector<4x256xf32>
    %101 = vector.extract_strided_slice %63 {offsets = [0, 4], sizes = [4, 1], strides = [1, 1]} : vector<4x25xf32> to vector<4x1xf32>
    %102 = vector.broadcast %101 : vector<4x1xf32> to vector<4x256xf32>
    %103 = arith.mulf %100, %102 : vector<4x256xf32>
    %104 = arith.addf %96, %103 : vector<4x256xf32>
    %c18_i32 = arith.constant 18 : i32
    %105 = tpu.dynamic_rotate %62 by %c18_i32 dim 1 : vector<4x256xf32>, i32 -> vector<4x256xf32>
    %c5 = arith.constant 5 : index
    %c0_18 = arith.constant 0 : index
    %106 = vector.load %arg6[%c5, %c0_18] : memref<25x256xf32, #tpu.memory_space<vmem>>, vector<1x256xf32>
    %107 = vector.broadcast %106 : vector<1x256xf32> to vector<4x256xf32>
    %108 = arith.mulf %105, %107 : vector<4x256xf32>
    %109 = vector.extract_strided_slice %63 {offsets = [0, 5], sizes = [4, 1], strides = [1, 1]} : vector<4x25xf32> to vector<4x1xf32>
    %110 = vector.broadcast %109 : vector<4x1xf32> to vector<4x256xf32>
    %111 = arith.mulf %108, %110 : vector<4x256xf32>
    %112 = arith.addf %104, %111 : vector<4x256xf32>
    %c17_i32 = arith.constant 17 : i32
    %113 = tpu.dynamic_rotate %62 by %c17_i32 dim 1 : vector<4x256xf32>, i32 -> vector<4x256xf32>
    %c6 = arith.constant 6 : index
    %c0_19 = arith.constant 0 : index
    %114 = vector.load %arg6[%c6, %c0_19] : memref<25x256xf32, #tpu.memory_space<vmem>>, vector<1x256xf32>
    %115 = vector.broadcast %114 : vector<1x256xf32> to vector<4x256xf32>
    %116 = arith.mulf %113, %115 : vector<4x256xf32>
    %117 = vector.extract_strided_slice %63 {offsets = [0, 6], sizes = [4, 1], strides = [1, 1]} : vector<4x25xf32> to vector<4x1xf32>
    %118 = vector.broadcast %117 : vector<4x1xf32> to vector<4x256xf32>
    %119 = arith.mulf %116, %118 : vector<4x256xf32>
    %120 = arith.addf %112, %119 : vector<4x256xf32>
    %c16_i32 = arith.constant 16 : i32
    %121 = tpu.dynamic_rotate %62 by %c16_i32 dim 1 : vector<4x256xf32>, i32 -> vector<4x256xf32>
    %c7 = arith.constant 7 : index
    %c0_20 = arith.constant 0 : index
    %122 = vector.load %arg6[%c7, %c0_20] : memref<25x256xf32, #tpu.memory_space<vmem>>, vector<1x256xf32>
    %123 = vector.broadcast %122 : vector<1x256xf32> to vector<4x256xf32>
    %124 = arith.mulf %121, %123 : vector<4x256xf32>
    %125 = vector.extract_strided_slice %63 {offsets = [0, 7], sizes = [4, 1], strides = [1, 1]} : vector<4x25xf32> to vector<4x1xf32>
    %126 = vector.broadcast %125 : vector<4x1xf32> to vector<4x256xf32>
    %127 = arith.mulf %124, %126 : vector<4x256xf32>
    %128 = arith.addf %120, %127 : vector<4x256xf32>
    %c15_i32 = arith.constant 15 : i32
    %129 = tpu.dynamic_rotate %62 by %c15_i32 dim 1 : vector<4x256xf32>, i32 -> vector<4x256xf32>
    %c8 = arith.constant 8 : index
    %c0_21 = arith.constant 0 : index
    %130 = vector.load %arg6[%c8, %c0_21] : memref<25x256xf32, #tpu.memory_space<vmem>>, vector<1x256xf32>
    %131 = vector.broadcast %130 : vector<1x256xf32> to vector<4x256xf32>
    %132 = arith.mulf %129, %131 : vector<4x256xf32>
    %133 = vector.extract_strided_slice %63 {offsets = [0, 8], sizes = [4, 1], strides = [1, 1]} : vector<4x25xf32> to vector<4x1xf32>
    %134 = vector.broadcast %133 : vector<4x1xf32> to vector<4x256xf32>
    %135 = arith.mulf %132, %134 : vector<4x256xf32>
    %136 = arith.addf %128, %135 : vector<4x256xf32>
    %c14_i32 = arith.constant 14 : i32
    %137 = tpu.dynamic_rotate %62 by %c14_i32 dim 1 : vector<4x256xf32>, i32 -> vector<4x256xf32>
    %c9 = arith.constant 9 : index
    %c0_22 = arith.constant 0 : index
    %138 = vector.load %arg6[%c9, %c0_22] : memref<25x256xf32, #tpu.memory_space<vmem>>, vector<1x256xf32>
    %139 = vector.broadcast %138 : vector<1x256xf32> to vector<4x256xf32>
    %140 = arith.mulf %137, %139 : vector<4x256xf32>
    %141 = vector.extract_strided_slice %63 {offsets = [0, 9], sizes = [4, 1], strides = [1, 1]} : vector<4x25xf32> to vector<4x1xf32>
    %142 = vector.broadcast %141 : vector<4x1xf32> to vector<4x256xf32>
    %143 = arith.mulf %140, %142 : vector<4x256xf32>
    %144 = arith.addf %136, %143 : vector<4x256xf32>
    %c2_i32 = arith.constant 2 : i32
    %145 = tpu.dynamic_rotate %62 by %c2_i32 dim 1 : vector<4x256xf32>, i32 -> vector<4x256xf32>
    %c10 = arith.constant 10 : index
    %c0_23 = arith.constant 0 : index
    %146 = vector.load %arg6[%c10, %c0_23] : memref<25x256xf32, #tpu.memory_space<vmem>>, vector<1x256xf32>
    %147 = vector.broadcast %146 : vector<1x256xf32> to vector<4x256xf32>
    %148 = arith.mulf %145, %147 : vector<4x256xf32>
    %149 = vector.extract_strided_slice %63 {offsets = [0, 10], sizes = [4, 1], strides = [1, 1]} : vector<4x25xf32> to vector<4x1xf32>
    %150 = vector.broadcast %149 : vector<4x1xf32> to vector<4x256xf32>
    %151 = arith.mulf %148, %150 : vector<4x256xf32>
    %152 = arith.addf %144, %151 : vector<4x256xf32>
    %c1_i32 = arith.constant 1 : i32
    %153 = tpu.dynamic_rotate %62 by %c1_i32 dim 1 : vector<4x256xf32>, i32 -> vector<4x256xf32>
    %c11 = arith.constant 11 : index
    %c0_24 = arith.constant 0 : index
    %154 = vector.load %arg6[%c11, %c0_24] : memref<25x256xf32, #tpu.memory_space<vmem>>, vector<1x256xf32>
    %155 = vector.broadcast %154 : vector<1x256xf32> to vector<4x256xf32>
    %156 = arith.mulf %153, %155 : vector<4x256xf32>
    %157 = vector.extract_strided_slice %63 {offsets = [0, 11], sizes = [4, 1], strides = [1, 1]} : vector<4x25xf32> to vector<4x1xf32>
    %158 = vector.broadcast %157 : vector<4x1xf32> to vector<4x256xf32>
    %159 = arith.mulf %156, %158 : vector<4x256xf32>
    %160 = arith.addf %152, %159 : vector<4x256xf32>
    %c12 = arith.constant 12 : index
    %c0_25 = arith.constant 0 : index
    %161 = vector.load %arg6[%c12, %c0_25] : memref<25x256xf32, #tpu.memory_space<vmem>>, vector<1x256xf32>
    %162 = vector.broadcast %161 : vector<1x256xf32> to vector<4x256xf32>
    %163 = arith.mulf %62, %162 : vector<4x256xf32>
    %164 = vector.extract_strided_slice %63 {offsets = [0, 12], sizes = [4, 1], strides = [1, 1]} : vector<4x25xf32> to vector<4x1xf32>
    %165 = vector.broadcast %164 : vector<4x1xf32> to vector<4x256xf32>
    %166 = arith.mulf %163, %165 : vector<4x256xf32>
    %167 = arith.addf %160, %166 : vector<4x256xf32>
    %c255_i32 = arith.constant 255 : i32
    %168 = tpu.dynamic_rotate %62 by %c255_i32 dim 1 : vector<4x256xf32>, i32 -> vector<4x256xf32>
    %c13 = arith.constant 13 : index
    %c0_26 = arith.constant 0 : index
    %169 = vector.load %arg6[%c13, %c0_26] : memref<25x256xf32, #tpu.memory_space<vmem>>, vector<1x256xf32>
    %170 = vector.broadcast %169 : vector<1x256xf32> to vector<4x256xf32>
    %171 = arith.mulf %168, %170 : vector<4x256xf32>
    %172 = vector.extract_strided_slice %63 {offsets = [0, 13], sizes = [4, 1], strides = [1, 1]} : vector<4x25xf32> to vector<4x1xf32>
    %173 = vector.broadcast %172 : vector<4x1xf32> to vector<4x256xf32>
    %174 = arith.mulf %171, %173 : vector<4x256xf32>
    %175 = arith.addf %167, %174 : vector<4x256xf32>
    %c254_i32 = arith.constant 254 : i32
    %176 = tpu.dynamic_rotate %62 by %c254_i32 dim 1 : vector<4x256xf32>, i32 -> vector<4x256xf32>
    %c14 = arith.constant 14 : index
    %c0_27 = arith.constant 0 : index
    %177 = vector.load %arg6[%c14, %c0_27] : memref<25x256xf32, #tpu.memory_space<vmem>>, vector<1x256xf32>
    %178 = vector.broadcast %177 : vector<1x256xf32> to vector<4x256xf32>
    %179 = arith.mulf %176, %178 : vector<4x256xf32>
    %180 = vector.extract_strided_slice %63 {offsets = [0, 14], sizes = [4, 1], strides = [1, 1]} : vector<4x25xf32> to vector<4x1xf32>
    %181 = vector.broadcast %180 : vector<4x1xf32> to vector<4x256xf32>
    %182 = arith.mulf %179, %181 : vector<4x256xf32>
    %183 = arith.addf %175, %182 : vector<4x256xf32>
    %c242_i32 = arith.constant 242 : i32
    %184 = tpu.dynamic_rotate %62 by %c242_i32 dim 1 : vector<4x256xf32>, i32 -> vector<4x256xf32>
    %c15 = arith.constant 15 : index
    %c0_28 = arith.constant 0 : index
    %185 = vector.load %arg6[%c15, %c0_28] : memref<25x256xf32, #tpu.memory_space<vmem>>, vector<1x256xf32>
    %186 = vector.broadcast %185 : vector<1x256xf32> to vector<4x256xf32>
    %187 = arith.mulf %184, %186 : vector<4x256xf32>
    %188 = vector.extract_strided_slice %63 {offsets = [0, 15], sizes = [4, 1], strides = [1, 1]} : vector<4x25xf32> to vector<4x1xf32>
    %189 = vector.broadcast %188 : vector<4x1xf32> to vector<4x256xf32>
    %190 = arith.mulf %187, %189 : vector<4x256xf32>
    %191 = arith.addf %183, %190 : vector<4x256xf32>
    %c241_i32 = arith.constant 241 : i32
    %192 = tpu.dynamic_rotate %62 by %c241_i32 dim 1 : vector<4x256xf32>, i32 -> vector<4x256xf32>
    %c16 = arith.constant 16 : index
    %c0_29 = arith.constant 0 : index
    %193 = vector.load %arg6[%c16, %c0_29] : memref<25x256xf32, #tpu.memory_space<vmem>>, vector<1x256xf32>
    %194 = vector.broadcast %193 : vector<1x256xf32> to vector<4x256xf32>
    %195 = arith.mulf %192, %194 : vector<4x256xf32>
    %196 = vector.extract_strided_slice %63 {offsets = [0, 16], sizes = [4, 1], strides = [1, 1]} : vector<4x25xf32> to vector<4x1xf32>
    %197 = vector.broadcast %196 : vector<4x1xf32> to vector<4x256xf32>
    %198 = arith.mulf %195, %197 : vector<4x256xf32>
    %199 = arith.addf %191, %198 : vector<4x256xf32>
    %c240_i32 = arith.constant 240 : i32
    %200 = tpu.dynamic_rotate %62 by %c240_i32 dim 1 : vector<4x256xf32>, i32 -> vector<4x256xf32>
    %c17 = arith.constant 17 : index
    %c0_30 = arith.constant 0 : index
    %201 = vector.load %arg6[%c17, %c0_30] : memref<25x256xf32, #tpu.memory_space<vmem>>, vector<1x256xf32>
    %202 = vector.broadcast %201 : vector<1x256xf32> to vector<4x256xf32>
    %203 = arith.mulf %200, %202 : vector<4x256xf32>
    %204 = vector.extract_strided_slice %63 {offsets = [0, 17], sizes = [4, 1], strides = [1, 1]} : vector<4x25xf32> to vector<4x1xf32>
    %205 = vector.broadcast %204 : vector<4x1xf32> to vector<4x256xf32>
    %206 = arith.mulf %203, %205 : vector<4x256xf32>
    %207 = arith.addf %199, %206 : vector<4x256xf32>
    %c239_i32 = arith.constant 239 : i32
    %208 = tpu.dynamic_rotate %62 by %c239_i32 dim 1 : vector<4x256xf32>, i32 -> vector<4x256xf32>
    %c18 = arith.constant 18 : index
    %c0_31 = arith.constant 0 : index
    %209 = vector.load %arg6[%c18, %c0_31] : memref<25x256xf32, #tpu.memory_space<vmem>>, vector<1x256xf32>
    %210 = vector.broadcast %209 : vector<1x256xf32> to vector<4x256xf32>
    %211 = arith.mulf %208, %210 : vector<4x256xf32>
    %212 = vector.extract_strided_slice %63 {offsets = [0, 18], sizes = [4, 1], strides = [1, 1]} : vector<4x25xf32> to vector<4x1xf32>
    %213 = vector.broadcast %212 : vector<4x1xf32> to vector<4x256xf32>
    %214 = arith.mulf %211, %213 : vector<4x256xf32>
    %215 = arith.addf %207, %214 : vector<4x256xf32>
    %c238_i32 = arith.constant 238 : i32
    %216 = tpu.dynamic_rotate %62 by %c238_i32 dim 1 : vector<4x256xf32>, i32 -> vector<4x256xf32>
    %c19 = arith.constant 19 : index
    %c0_32 = arith.constant 0 : index
    %217 = vector.load %arg6[%c19, %c0_32] : memref<25x256xf32, #tpu.memory_space<vmem>>, vector<1x256xf32>
    %218 = vector.broadcast %217 : vector<1x256xf32> to vector<4x256xf32>
    %219 = arith.mulf %216, %218 : vector<4x256xf32>
    %220 = vector.extract_strided_slice %63 {offsets = [0, 19], sizes = [4, 1], strides = [1, 1]} : vector<4x25xf32> to vector<4x1xf32>
    %221 = vector.broadcast %220 : vector<4x1xf32> to vector<4x256xf32>
    %222 = arith.mulf %219, %221 : vector<4x256xf32>
    %223 = arith.addf %215, %222 : vector<4x256xf32>
    %c226_i32 = arith.constant 226 : i32
    %224 = tpu.dynamic_rotate %62 by %c226_i32 dim 1 : vector<4x256xf32>, i32 -> vector<4x256xf32>
    %c20 = arith.constant 20 : index
    %c0_33 = arith.constant 0 : index
    %225 = vector.load %arg6[%c20, %c0_33] : memref<25x256xf32, #tpu.memory_space<vmem>>, vector<1x256xf32>
    %226 = vector.broadcast %225 : vector<1x256xf32> to vector<4x256xf32>
    %227 = arith.mulf %224, %226 : vector<4x256xf32>
    %228 = vector.extract_strided_slice %63 {offsets = [0, 20], sizes = [4, 1], strides = [1, 1]} : vector<4x25xf32> to vector<4x1xf32>
    %229 = vector.broadcast %228 : vector<4x1xf32> to vector<4x256xf32>
    %230 = arith.mulf %227, %229 : vector<4x256xf32>
    %231 = arith.addf %223, %230 : vector<4x256xf32>
    %c225_i32 = arith.constant 225 : i32
    %232 = tpu.dynamic_rotate %62 by %c225_i32 dim 1 : vector<4x256xf32>, i32 -> vector<4x256xf32>
    %c21 = arith.constant 21 : index
    %c0_34 = arith.constant 0 : index
    %233 = vector.load %arg6[%c21, %c0_34] : memref<25x256xf32, #tpu.memory_space<vmem>>, vector<1x256xf32>
    %234 = vector.broadcast %233 : vector<1x256xf32> to vector<4x256xf32>
    %235 = arith.mulf %232, %234 : vector<4x256xf32>
    %236 = vector.extract_strided_slice %63 {offsets = [0, 21], sizes = [4, 1], strides = [1, 1]} : vector<4x25xf32> to vector<4x1xf32>
    %237 = vector.broadcast %236 : vector<4x1xf32> to vector<4x256xf32>
    %238 = arith.mulf %235, %237 : vector<4x256xf32>
    %239 = arith.addf %231, %238 : vector<4x256xf32>
    %c224_i32 = arith.constant 224 : i32
    %240 = tpu.dynamic_rotate %62 by %c224_i32 dim 1 : vector<4x256xf32>, i32 -> vector<4x256xf32>
    %c22 = arith.constant 22 : index
    %c0_35 = arith.constant 0 : index
    %241 = vector.load %arg6[%c22, %c0_35] : memref<25x256xf32, #tpu.memory_space<vmem>>, vector<1x256xf32>
    %242 = vector.broadcast %241 : vector<1x256xf32> to vector<4x256xf32>
    %243 = arith.mulf %240, %242 : vector<4x256xf32>
    %244 = vector.extract_strided_slice %63 {offsets = [0, 22], sizes = [4, 1], strides = [1, 1]} : vector<4x25xf32> to vector<4x1xf32>
    %245 = vector.broadcast %244 : vector<4x1xf32> to vector<4x256xf32>
    %246 = arith.mulf %243, %245 : vector<4x256xf32>
    %247 = arith.addf %239, %246 : vector<4x256xf32>
    %c223_i32 = arith.constant 223 : i32
    %248 = tpu.dynamic_rotate %62 by %c223_i32 dim 1 : vector<4x256xf32>, i32 -> vector<4x256xf32>
    %c23 = arith.constant 23 : index
    %c0_36 = arith.constant 0 : index
    %249 = vector.load %arg6[%c23, %c0_36] : memref<25x256xf32, #tpu.memory_space<vmem>>, vector<1x256xf32>
    %250 = vector.broadcast %249 : vector<1x256xf32> to vector<4x256xf32>
    %251 = arith.mulf %248, %250 : vector<4x256xf32>
    %252 = vector.extract_strided_slice %63 {offsets = [0, 23], sizes = [4, 1], strides = [1, 1]} : vector<4x25xf32> to vector<4x1xf32>
    %253 = vector.broadcast %252 : vector<4x1xf32> to vector<4x256xf32>
    %254 = arith.mulf %251, %253 : vector<4x256xf32>
    %255 = arith.addf %247, %254 : vector<4x256xf32>
    %c222_i32 = arith.constant 222 : i32
    %256 = tpu.dynamic_rotate %62 by %c222_i32 dim 1 : vector<4x256xf32>, i32 -> vector<4x256xf32>
    %c24 = arith.constant 24 : index
    %c0_37 = arith.constant 0 : index
    %257 = vector.load %arg6[%c24, %c0_37] : memref<25x256xf32, #tpu.memory_space<vmem>>, vector<1x256xf32>
    %258 = vector.broadcast %257 : vector<1x256xf32> to vector<4x256xf32>
    %259 = arith.mulf %256, %258 : vector<4x256xf32>
    %260 = vector.extract_strided_slice %63 {offsets = [0, 24], sizes = [4, 1], strides = [1, 1]} : vector<4x25xf32> to vector<4x1xf32>
    %261 = vector.broadcast %260 : vector<4x1xf32> to vector<4x256xf32>
    %262 = arith.mulf %259, %261 : vector<4x256xf32>
    %263 = arith.addf %255, %262 : vector<4x256xf32>
    %c0_38 = arith.constant 0 : index
    %c0_39 = arith.constant 0 : index
    %264 = vector.load %arg5[%c0_38, %c0_39] : memref<4x1xf32, #tpu.memory_space<vmem>>, vector<4x1xf32>
    %265 = vector.broadcast %264 : vector<4x1xf32> to vector<4x256xf32>
    %266 = arith.addf %263, %265 : vector<4x256xf32>
    %cst_40 = arith.constant 5.000000e-01 : f32
    %267 = vector.broadcast %cst_40 : f32 to vector<4x256xf32>
    %268 = arith.mulf %267, %266 : vector<4x256xf32>
    %cst_41 = arith.constant 5.000000e-01 : f32
    %269 = vector.broadcast %cst_41 : f32 to vector<4x256xf32>
    %270 = arith.mulf %269, %266 : vector<4x256xf32>
    %271 = math.tanh %270 : vector<4x256xf32>
    %cst_42 = arith.constant 1.000000e+00 : f32
    %272 = vector.broadcast %cst_42 : f32 to vector<4x256xf32>
    %273 = arith.addf %271, %272 : vector<4x256xf32>
    %274 = arith.mulf %268, %273 : vector<4x256xf32>
    %c0_43 = arith.constant 0 : index
    %c0_44 = arith.constant 0 : index
    %275 = vector.load %arg7[%c0_43, %c0_44] : memref<8x8xf32, #tpu.memory_space<vmem>>, vector<8x8xf32>
    %cst_45 = arith.constant 0.000000e+00 : f32
    %276 = vector.broadcast %cst_45 : f32 to vector<8x256xf32>
    %277 = vector.extract_strided_slice %275 {offsets = [0, 0], sizes = [8, 1], strides = [1, 1]} : vector<8x8xf32> to vector<8x1xf32>
    %278 = vector.extract_strided_slice %62 {offsets = [0, 0], sizes = [1, 256], strides = [1, 1]} : vector<4x256xf32> to vector<1x256xf32>
    %279 = vector.broadcast %277 : vector<8x1xf32> to vector<8x256xf32>
    %280 = vector.broadcast %278 : vector<1x256xf32> to vector<8x256xf32>
    %281 = arith.mulf %279, %280 : vector<8x256xf32>
    %282 = arith.addf %276, %281 : vector<8x256xf32>
    %283 = vector.extract_strided_slice %275 {offsets = [0, 1], sizes = [8, 1], strides = [1, 1]} : vector<8x8xf32> to vector<8x1xf32>
    %284 = vector.extract_strided_slice %62 {offsets = [1, 0], sizes = [1, 256], strides = [1, 1]} : vector<4x256xf32> to vector<1x256xf32>
    %285 = vector.broadcast %283 : vector<8x1xf32> to vector<8x256xf32>
    %286 = vector.broadcast %284 : vector<1x256xf32> to vector<8x256xf32>
    %287 = arith.mulf %285, %286 : vector<8x256xf32>
    %288 = arith.addf %282, %287 : vector<8x256xf32>
    %289 = vector.extract_strided_slice %275 {offsets = [0, 2], sizes = [8, 1], strides = [1, 1]} : vector<8x8xf32> to vector<8x1xf32>
    %290 = vector.extract_strided_slice %62 {offsets = [2, 0], sizes = [1, 256], strides = [1, 1]} : vector<4x256xf32> to vector<1x256xf32>
    %291 = vector.broadcast %289 : vector<8x1xf32> to vector<8x256xf32>
    %292 = vector.broadcast %290 : vector<1x256xf32> to vector<8x256xf32>
    %293 = arith.mulf %291, %292 : vector<8x256xf32>
    %294 = arith.addf %288, %293 : vector<8x256xf32>
    %295 = vector.extract_strided_slice %275 {offsets = [0, 3], sizes = [8, 1], strides = [1, 1]} : vector<8x8xf32> to vector<8x1xf32>
    %296 = vector.extract_strided_slice %62 {offsets = [3, 0], sizes = [1, 256], strides = [1, 1]} : vector<4x256xf32> to vector<1x256xf32>
    %297 = vector.broadcast %295 : vector<8x1xf32> to vector<8x256xf32>
    %298 = vector.broadcast %296 : vector<1x256xf32> to vector<8x256xf32>
    %299 = arith.mulf %297, %298 : vector<8x256xf32>
    %300 = arith.addf %294, %299 : vector<8x256xf32>
    %301 = vector.extract_strided_slice %275 {offsets = [0, 4], sizes = [8, 1], strides = [1, 1]} : vector<8x8xf32> to vector<8x1xf32>
    %302 = vector.extract_strided_slice %274 {offsets = [0, 0], sizes = [1, 256], strides = [1, 1]} : vector<4x256xf32> to vector<1x256xf32>
    %303 = vector.broadcast %301 : vector<8x1xf32> to vector<8x256xf32>
    %304 = vector.broadcast %302 : vector<1x256xf32> to vector<8x256xf32>
    %305 = arith.mulf %303, %304 : vector<8x256xf32>
    %306 = arith.addf %300, %305 : vector<8x256xf32>
    %307 = vector.extract_strided_slice %275 {offsets = [0, 5], sizes = [8, 1], strides = [1, 1]} : vector<8x8xf32> to vector<8x1xf32>
    %308 = vector.extract_strided_slice %274 {offsets = [1, 0], sizes = [1, 256], strides = [1, 1]} : vector<4x256xf32> to vector<1x256xf32>
    %309 = vector.broadcast %307 : vector<8x1xf32> to vector<8x256xf32>
    %310 = vector.broadcast %308 : vector<1x256xf32> to vector<8x256xf32>
    %311 = arith.mulf %309, %310 : vector<8x256xf32>
    %312 = arith.addf %306, %311 : vector<8x256xf32>
    %313 = vector.extract_strided_slice %275 {offsets = [0, 6], sizes = [8, 1], strides = [1, 1]} : vector<8x8xf32> to vector<8x1xf32>
    %314 = vector.extract_strided_slice %274 {offsets = [2, 0], sizes = [1, 256], strides = [1, 1]} : vector<4x256xf32> to vector<1x256xf32>
    %315 = vector.broadcast %313 : vector<8x1xf32> to vector<8x256xf32>
    %316 = vector.broadcast %314 : vector<1x256xf32> to vector<8x256xf32>
    %317 = arith.mulf %315, %316 : vector<8x256xf32>
    %318 = arith.addf %312, %317 : vector<8x256xf32>
    %319 = vector.extract_strided_slice %275 {offsets = [0, 7], sizes = [8, 1], strides = [1, 1]} : vector<8x8xf32> to vector<8x1xf32>
    %320 = vector.extract_strided_slice %274 {offsets = [3, 0], sizes = [1, 256], strides = [1, 1]} : vector<4x256xf32> to vector<1x256xf32>
    %321 = vector.broadcast %319 : vector<8x1xf32> to vector<8x256xf32>
    %322 = vector.broadcast %320 : vector<1x256xf32> to vector<8x256xf32>
    %323 = arith.mulf %321, %322 : vector<8x256xf32>
    %324 = arith.addf %318, %323 : vector<8x256xf32>
    %c0_46 = arith.constant 0 : index
    %c0_47 = arith.constant 0 : index
    %325 = vector.load %arg8[%c0_46, %c0_47] : memref<8x1xf32, #tpu.memory_space<vmem>>, vector<8x1xf32>
    %326 = vector.broadcast %325 : vector<8x1xf32> to vector<8x256xf32>
    %327 = arith.addf %324, %326 : vector<8x256xf32>
    %cst_48 = arith.constant 5.000000e-01 : f32
    %328 = vector.broadcast %cst_48 : f32 to vector<8x256xf32>
    %329 = arith.mulf %328, %327 : vector<8x256xf32>
    %cst_49 = arith.constant 5.000000e-01 : f32
    %330 = vector.broadcast %cst_49 : f32 to vector<8x256xf32>
    %331 = arith.mulf %330, %327 : vector<8x256xf32>
    %332 = math.tanh %331 : vector<8x256xf32>
    %cst_50 = arith.constant 1.000000e+00 : f32
    %333 = vector.broadcast %cst_50 : f32 to vector<8x256xf32>
    %334 = arith.addf %332, %333 : vector<8x256xf32>
    %335 = arith.mulf %329, %334 : vector<8x256xf32>
    %c0_51 = arith.constant 0 : index
    %c0_52 = arith.constant 0 : index
    %c0_53 = arith.constant 0 : index
    %336 = vector.load %arg9[%c0_51, %c0_52, %c0_53] : memref<1x8x256xf32, #tpu.memory_space<vmem>>, vector<1x8x256xf32>
    %337 = vector.shape_cast %336 : vector<1x8x256xf32> to vector<8x256xf32>
    %338 = vector.shape_cast %335 : vector<8x256xf32> to vector<1x8x256xf32>
    tpu.vector_store %arg9[%c0_51, %c0_52, %c0_53], %338 {strides = array<i32>} : memref<1x8x256xf32, #tpu.memory_space<vmem>>, vector<1x8x256xf32>,
    return
  }
  func.func @transform_0(%arg0: i32) -> (i32, i32, i32) {
    %c0_i32 = arith.constant 0 : i32
    %c0_i32_0 = arith.constant 0 : i32
    %c0_i32_1 = arith.constant 0 : i32
    return %arg0, %c0_i32, %c0_i32_0 : i32, i32, i32
  }
  func.func @transform_1(%arg0: i32) -> (i32, i32) {
    %c0_i32 = arith.constant 0 : i32
    %c0_i32_0 = arith.constant 0 : i32
    %c0_i32_1 = arith.constant 0 : i32
    return %c0_i32, %c0_i32_0 : i32, i32
  }
  func.func @transform_2(%arg0: i32) -> (i32, i32) {
    %c0_i32 = arith.constant 0 : i32
    %c0_i32_0 = arith.constant 0 : i32
    %c0_i32_1 = arith.constant 0 : i32
    return %c0_i32, %c0_i32_0 : i32, i32
  }
  func.func @transform_3(%arg0: i32) -> (i32, i32) {
    %c0_i32 = arith.constant 0 : i32
    %c0_i32_0 = arith.constant 0 : i32
    %c0_i32_1 = arith.constant 0 : i32
    return %c0_i32, %c0_i32_0 : i32, i32
  }
  func.func @transform_4(%arg0: i32) -> (i32, i32) {
    %c0_i32 = arith.constant 0 : i32
    %c0_i32_0 = arith.constant 0 : i32
    %c0_i32_1 = arith.constant 0 : i32
    return %c0_i32, %c0_i32_0 : i32, i32
  }
  func.func @transform_5(%arg0: i32) -> (i32, i32) {
    %c0_i32 = arith.constant 0 : i32
    %c0_i32_0 = arith.constant 0 : i32
    %c0_i32_1 = arith.constant 0 : i32
    return %c0_i32, %c0_i32_0 : i32, i32
  }
  func.func @transform_6(%arg0: i32) -> (i32, i32) {
    %c0_i32 = arith.constant 0 : i32
    %c0_i32_0 = arith.constant 0 : i32
    %c0_i32_1 = arith.constant 0 : i32
    return %c0_i32, %c0_i32_0 : i32, i32
  }
  func.func @transform_7(%arg0: i32) -> (i32, i32) {
    %c0_i32 = arith.constant 0 : i32
    %c0_i32_0 = arith.constant 0 : i32
    %c0_i32_1 = arith.constant 0 : i32
    return %c0_i32, %c0_i32_0 : i32, i32
  }
  func.func @transform_8(%arg0: i32) -> (i32, i32, i32) {
    %c0_i32 = arith.constant 0 : i32
    %c0_i32_0 = arith.constant 0 : i32
    %c0_i32_1 = arith.constant 0 : i32
    return %arg0, %c0_i32, %c0_i32_0 : i32, i32, i32
  }
}

</mosaic_0001>

<bundles_post_ra>
// kernel: tpu_custom_call.1
= control target key start
LH: loop header
LB: loop body
LE: loop exit
PB: predicated region body
PF: predicated region fallthrough
CT: control target
= control target key end

     0   :  { %s2132_s0 = inlined_call_operand.hbm [shape: f32[2,8,256], index: 0, kind: input, shape index: {}]   ;;  %s2133_s1 = inlined_call_operand.vmem [shape: f32[4,8], index: 1, kind: input, shape index: {}]   ;;  %s2134_s2 = inlined_call_operand.vmem [shape: f32[4,1], index: 2, kind: input, shape index: {}]   ;;  %s2135_s3 = inlined_call_operand.vmem [shape: f32[4,25], index: 3, kind: input, shape index: {}]   ;;  %s2136_s4 = inlined_call_operand.vmem [shape: f32[4,1], index: 4, kind: input, shape index: {}]   ;;  %s2137_s5 = inlined_call_operand.hbm [shape: f32[25,256], index: 5, kind: input, shape index: {}]   ;;  %s2138_s6 = inlined_call_operand.vmem [shape: f32[8,8], index: 6, kind: input, shape index: {}]   ;;  %s2139_s7 = inlined_call_operand.vmem [shape: f32[8,1], index: 7, kind: input, shape index: {}]   ;;  %s2140_s8 = inlined_call_operand.hbm [shape: f32[2,8,256], index: 8, kind: output, shape index: {}]  }
   0x1   :  { %2142 = sst [smem:[#allocation12_spill]] %s2137_s5 }
   0x2   :  { %13 = vsyncpa [#allocation3], 0 }
   0x3   :  { %15 = vsyncpa [#allocation3 + $0x1], 0 }
   0x4   :  { %16 = vsyncpa [#allocation6], 0 }
   0x5   :  { %17 = vsyncpa [#allocation4], 0 }
   0x6   :  { %19 = vsyncpa [#allocation4 + $0x1], 0  ;;  %s1660_s27 = smov 0   ;;  %s1662_s28 = smov 0  }
   0x7   :  { %s1664_s29 = smov 0   ;;  %s1666_s30 = smov 0  }
   0x8 LB: > { %s2143_s5 = sld [smem:[#allocation12_spill]]  ;;  %s1684_s12 = sadd.s32 4294967295, %s1561_s30   ;;  %s1561_s30 = sphi %s1666_s30, %s2156_s30   ;;  %s1557_s29 = sphi %s1664_s29, %s2155_s29   ;;  %s1553_s28 = sphi %s1662_s28, %s2154_s28   ;;  %s1549_s27 = sphi %s1660_s27, %s2153_s27  }
   0x9   : > { %p1251_p0 = scmp.ge.s32.totalorder %s1561_s30, 1  ;;  %p46_p1 = scmp.eq.s32.totalorder %s1684_s12, 0 }
   0xa   : > { %p229_p2 = scmp.lt.s32.totalorder %s1561_s30, 3  ;;  %s1563_s14 = smov [#allocation5]  }
   0xb   : > { %s254_s15 = sshll.u32 %s1563_s14, 4  ;;  %s1564_s16 = smov 256   ;;  %s255_s15 = int_to_ptr.vmem [resolvable:$true] %s254_s15 }
   0xc   : > { %p1689_p3 = pnand %p1251_p0, %p229_p2  ;;  %s1565_s17 = smov 16  }
   0xd   : > { %s1250_s18 = sadd.s32 4294967294, %s1561_s30   ;;  %s1700_s19 = sadd.s32 1, %s1561_s30  }
   0xe   : > { %s252_s11 = sshll.u32 %s2143_s5, 4  ;;  %p1276_p4 = pneg %p1689_p3  ;;  %s253_s11 = int_to_ptr.hbm [resolvable:$true] %s252_s11 }
   0xf   : > { %s32_s20 = sadd.s32 1, %s1557_s29  ;;  %s29_s21 = ssub.s32 %s1561_s30, %s1700_s19 }
  0x10   : > { %p1277_p6 = pnand %p1276_p4, %p46_p1  ;;  %p39_p7 = scmp.ne.s32.totalorder %s1557_s29, %s1553_s28 }
  0x11   : > { %p30_p8 = scmp.eq.s32.totalorder %s29_s21, 0  ;;  %p40_p9 = scmp.eq.s32.totalorder %s1561_s30, 0 }
  0x12   : > { %1279 = dma.hbm_to_vmem [thread:$0]  (!%p1277_p6), %s253_s11, 1024, %s255_s15, [#allocation6], %s1564_s16, %s1564_s16, %s1565_s17  }
  0x13   : > { %p45_p10 = scmp.ne.s32.totalorder %s1553_s28, %s1549_s27  ;;  %p216_p11 = scmp.eq.s32.totalorder %s1684_s12, 1 }
  0x14   : > { %s1712_s22 = scalar_select %p30_p8, %s1557_s29, %s32_s20  }
  0x15   : > { %p1716_p12 = por %p46_p1, %p45_p10  ;;  %p1720_p13 = por %p216_p11, %p39_p7 }
  0x16   : > { %2145 = sst [smem:[#allocation11_spill]] %s1712_s22  ;;  %p222_p0 = scmp.eq.s32.totalorder %s1250_s18, 1 }
  0x17   : > { %p41_p2 = por %p40_p9, %p39_p7  ;;  %s274_s25 = sand.u32 1, %s1557_s29  }
  0x18   : > { %p1725_p4 = por %p222_p0, %p45_p10  ;;  %p1289_p6 = scmp.lt.s32.totalorder %s1561_s30, 2 }
  0x19   : > { %s1254_s9 = sshll.u32 %s274_s25, 4  ;;  %s1266_s10 = sshll.u32 %s1561_s30, 4 }
  0x1a   : > { %s283_s15 = scalar_lea.hbm %s2132_s0, %s1266_s10  ;;  %s278_s17 = scalar_lea.vmem [#allocation2], %s1254_s9 }
  0x1b   : > { %s285_s16 = sshll.u32 %s283_s15, 4  ;;  %s287_s20 = sshll.u32 %s278_s17, 4  ;;  %s286_s16 = int_to_ptr.hbm [resolvable:$true] %s285_s16  ;;  %s288_s20 = int_to_ptr.vmem [resolvable:$true] %s287_s20 }
  0x1c   : > { %p1734_p8 = pnand %p1289_p6, %p41_p2  ;;  %s275_s21 = scalar_lea.sflag [#allocation3], %s274_s25 }
  0x1d   : > { %s1461_s5 = sshra.s32 %s286_s16, 4  ;;  %s1468_s9 = scalar_lea.hbm %s2132_s0, 32  ;;  %s1462_s5 = int_to_ptr.hbm [resolvable:$true] %s1461_s5 }
  0x1e   : > { %s1463_s22 = scalar_lea.hbm %s1462_s5, 16  ;;  %p1465_p9 = pneg %p1734_p8 }
  0x1f   : > { %p1464_p7 = scmp.ne.s32.totalorder %s1462_s5, %s1463_s22  ;;  %p1469_p0 = scmp.lt.s32.totalorder %s1462_s5, %s2132_s0 }
  0x20   : > { %p1470_p2 = scmp.lt.s32.totalorder %s1468_s9, %s1463_s22 }
  0x21   : > { %p1466_p10 = pnand %p1465_p9, %p1464_p7 }
  0x22   : > { %p1471_p6 = por %p1470_p2, %p1469_p0 }
  0x23   : > { %p1467_p11 = pneg %p1466_p10 }
  0x25   : > { %p1472_p5 = pnand %p1471_p6, %p1467_p11 }
  0x27   : > { %1475 = shalt.err (!%p1472_p5)
}
  0x28   : > { %1283 = dma.hbm_to_vmem [thread:$0]  (!%p1734_p8), %s286_s16, 256, %s288_s20, %s275_s21  }
  0x29   : > { %296 = sbr.rel (%p1689_p3) target bundleno = 552 (0x228), region = 52  ;;  %s1751_s25 = sand.u32 (!%p1689_p3), 1, %s1553_s28  }
  0x2a   : > { %s2141_s17 = sshll.u32 (!%p1689_p3), %s1751_s25, 4  ;;  %s299_s10 = scalar_lea.sflag (!%p1689_p3), [#allocation3], %s1751_s25 }
  0x2b   : > { %s1757_s5 = scalar_lea.vmem (!%p1689_p3), [#allocation2], %s2141_s17 }
  0x2e   : > { %1536 = dma.done.wait (%p1716_p12), %s299_s10, 256  }
  0x2f   : > { %1538 = vsyncadd (%p1716_p12), %s299_s10, 4294967040 }
  0x30   : > { %1540 = dma.done.wait (%p46_p1), [#allocation6], 1024  }
  0x31   : > { %1542 = vsyncadd (%p46_p1), [#allocation6], 4294966272  ;;  %v1566_v0 = vmov 1   ;;  %v1567_v1 = vmov 2   ;;  %v1568_v2 = vmov 4   ;;  %v1569_v4 = vmov 0  }
  0x32   : > { %1376 = vset.pattern.permute.xlu0 %v1566_v0  ;;  %1378 = vset.pattern.permute.xlu1 %v1567_v1  ;;  %v343_v3 = vld [vmem:[%s2133_s1] sm:$0xf]  ;;  %v1570_v5 = vmov 3   ;;  %v1571_v6 = vmov 5   ;;  %v1572_v8 = vmov 6   ;;  %v1573_v9 = vmov 7  }
  0x33   : > { %1380 = vset.pattern.permute.xlu2 %v1568_v2  ;;  %356 = vperm.xlu0 %1376, %v343_v3   ;;  %v425_v7 = vld [vmem:[%s2134_s2] sm:$0xf]  ;;  %v1574_v11 = vmov 12   ;;  %v1575_v12 = vmov 13   ;;  %v1576_v13 = vmov 14   ;;  %v1577_v14 = vmov 8  }
  0x34   : > { %366 = vperm.xlu1 %1378, %v343_v3   ;;  %386 = vperm.xlu2 %1380, %v343_v3   ;;  %v1784_v10 = vld [vmem:[%s2135_s3] sm:$0xf]  ;;  %v1578_v15 = vmov 15   ;;  %v1579_v16 = vmov 9   ;;  %v1580_v20 = vmov 16   ;;  %v1581_v21 = vmov 10  }
  0x35   : > { %v341_v22 = vld [vmem:[%s1757_s5] sm:$0xff]  ;;  %v342_v23 = vld [vmem:[%s1757_s5 + $0x8] sm:$0xff]  ;;  %v1582_v41 = vmov 11   ;;  %s1583_s21 = smov 34   ;;  %s1584_s11 = smov 33  }
  0x36   : > { %v359_v24 = vperm.slane %v341_v22, 1  ;;  %v360_v25 = vperm.slane %v342_v23, 1  ;;  %v349_v26 = vperm.slane %v341_v22, 0  ;;  %v350_v27 = vperm.slane %v342_v23, 0  ;;  %s1585_s9 = smov 127   ;;  %s1586_s14 = smov 32  }
  0x37   : > { %v369_v29 = vperm.slane %v341_v22, 2  ;;  %v370_v30 = vperm.slane %v342_v23, 2  ;;  %v379_v33 = vperm.slane %v341_v22, 3  ;;  %v380_v34 = vperm.slane %v342_v23, 3  ;;  %s1587_s15 = smov 126   ;;  %s1588_s10 = smov 31  }
  0x38   : > { %v389_v39 = vperm.slane %v341_v22, 4  ;;  %v390_v40 = vperm.slane %v342_v23, 4  ;;  %v399_v46 = vperm.slane %v341_v22, 5  ;;  %v400_v47 = vperm.slane %v342_v23, 5  ;;  %s1589_s5 = smov 114   ;;  %s1590_s13 = smov 30  }
  0x39   : > { %v409_v54 = vperm.slane %v341_v22, 6  ;;  %v410_v55 = vperm.slane %v342_v23, 6  ;;  %v419_v58 = vperm.slane %v341_v22, 7  ;;  %v420_v59 = vperm.slane %v342_v23, 7  ;;  %s1591_s22 = smov 113   ;;  %s1592_s23 = smov 18  }
  0x3a   : > { %s1593_s16 = smov 112   ;;  %s1594_s20 = smov 17  }
  0x3b   : > { %1377 = vset.pattern.permute.xlu0 %v1569_v4  ;;  %s1595_s18 = smov 111   ;;  %s1606_s17 = smov 1  }
  0x3c   : > { %1379 = vset.pattern.permute.xlu1 %v1570_v5  ;;  %346 = vperm.xlu0 %1377, %v343_v3  }
  0x3d   : > { %376 = vperm.xlu1 %1379, %v343_v3   ;;  %1381 = vset.pattern.permute.xlu2 %v1571_v6 }
  0x3e   : > { %396 = vperm.xlu2 %1381, %v343_v3  }
  0x44   : > { %428 = vperm.xlu0 %1377, %v425_v7  }
  0x45   : > { %1382 = vset.pattern.permute.xlu1 %v1572_v8 }
  0x46   : > { %406 = vperm.xlu1 %1382, %v343_v3   ;;  %1383 = vset.pattern.permute.xlu2 %v1573_v9 }
  0x47   : > { %416 = vperm.xlu2 %1383, %v343_v3  }
  0x4e   : > { %1384 = vset.pattern.permute.xlu1 %v1569_v4 }
  0x4f   : > { %461 = vperm.xlu1 %1384, %v1784_v10   ;;  %1396 = vset.pattern.permute.xlu2 %v1574_v11 }
  0x50   : > { %742 = vperm.xlu2 %1396, %v1784_v10  }
  0x57   : > { %1385 = vset.pattern.permute.xlu1 %v1566_v0 }
  0x58   : > { %485 = vperm.xlu1 %1385, %v1784_v10   ;;  %1397 = vset.pattern.permute.xlu2 %v1575_v12 }
  0x59   : > { %766 = vperm.xlu2 %1397, %v1784_v10  }
  0x60   : > { %1386 = vset.pattern.permute.xlu1 %v1567_v1 }
  0x61   : > { %509 = vperm.xlu1 %1386, %v1784_v10   ;;  %1398 = vset.pattern.permute.xlu2 %v1576_v13 }
  0x62   : > { %790 = vperm.xlu2 %1398, %v1784_v10  }
  0x69   : > { %1387 = vset.pattern.permute.xlu1 %v1570_v5 }
  0x6a   : > { %533 = vperm.xlu1 %1387, %v1784_v10   ;;  %1399 = vset.pattern.permute.xlu2 %v1578_v15 }
  0x6b   : > { %814 = vperm.xlu2 %1399, %v1784_v10  }
  0x72   : > { %1388 = vset.pattern.permute.xlu1 %v1568_v2 }
  0x73   : > { %557 = vperm.xlu1 %1388, %v1784_v10   ;;  %1400 = vset.pattern.permute.xlu2 %v1580_v20 }
  0x74   : > { %838 = vperm.xlu2 %1400, %v1784_v10  }
  0x7b   : > { %1389 = vset.pattern.permute.xlu1 %v1571_v6 }
  0x7c   : > { %581 = vperm.xlu1 %1389, %v1784_v10  }
  0x84   : > { %1390 = vset.pattern.permute.xlu1 %v1572_v8 }
  0x85   : > { %605 = vperm.xlu1 %1390, %v1784_v10  }
  0x8d   : > { %1391 = vset.pattern.permute.xlu1 %v1573_v9 }
  0x8e   : > { %629 = vperm.xlu1 %1391, %v1784_v10   ;;  %v387_v17 = vpop.permute.xlu2 %386 }
  0x8f   : > { %v391_v52 = vmul.f32 %v389_v39, %v387_v17  ;;  %v392_v53 = vmul.f32 %v390_v40, %v387_v17  ;;  %v1597_v39 = vmov 22  }
  0x96   : > { %1392 = vset.pattern.permute.xlu1 %v1577_v14 }
  0x97   : > { %653 = vperm.xlu1 %1392, %v1784_v10  }
  0x98   : > { %v397_v28 = vpop.permute.xlu2 %396 }
  0x99   : > { %v401_v63 = vmul.f32 %v399_v46, %v397_v28  ;;  %v402_v3 = vmul.f32 %v400_v47, %v397_v28 }
  0x9f   : > { %1393 = vset.pattern.permute.xlu1 %v1579_v16 }
  0xa0   : > { %677 = vperm.xlu1 %1393, %v1784_v10  }
  0xa1   : > { %v417_v60 = vpop.permute.xlu2 %416 }
  0xa2   : > { %v421_v15 = vmul.f32 %v419_v58, %v417_v60  ;;  %v422_v16 = vmul.f32 %v420_v59, %v417_v60  ;;  %v451_v59 = vld [vmem:[#allocation5] ss:$8 sm:$0x3]  ;;  %v476_v60 = vld [vmem:[#allocation5 + $0x1] ss:$8 sm:$0x3] }
  0xa5   : > { %v357_v18 = vpop.permute.xlu0 %356 }
  0xa6   : > { %v367_v19 = vpop.permute.xlu1 %366  ;;  %v361_v35 = vmul.f32 %v359_v24, %v357_v18  ;;  %v362_v36 = vmul.f32 %v360_v25, %v357_v18 }
  0xa7   : > { %v371_v42 = vmul.f32 %v369_v29, %v367_v19  ;;  %v372_v43 = vmul.f32 %v370_v30, %v367_v19 }
  0xa8   : > { %1394 = vset.pattern.permute.xlu1 %v1581_v21 }
  0xa9   : > { %701 = vperm.xlu1 %1394, %v1784_v10  }
  0xae   : > { %v347_v31 = vpop.permute.xlu0 %346 }
  0xaf   : > { %v377_v32 = vpop.permute.xlu1 %376  ;;  %v351_v37 = vmul.f32 %v349_v26, %v347_v31  ;;  %v352_v38 = vmul.f32 %v350_v27, %v347_v31 }
  0xb0   : > { %v381_v50 = vmul.f32 %v379_v33, %v377_v32  ;;  %v382_v51 = vmul.f32 %v380_v34, %v377_v32 }
  0xb1   : > { %1395 = vset.pattern.permute.xlu1 %v1582_v41  ;;  %v363_v44 = vadd.f32 %v361_v35, %v351_v37  ;;  %v364_v45 = vadd.f32 %v362_v36, %v352_v38  ;;  %v1850_v37 = vpop.permute.xlu2 %742 }
  0xb2   : > { %725 = vperm.xlu1 %1395, %v1784_v10  }
  0xb3   : > { %v373_v48 = vadd.f32 %v371_v42, %v363_v44  ;;  %v374_v49 = vadd.f32 %v372_v43, %v364_v45  ;;  %v1600_v42 = vmov 17  }
  0xb4   : > { %1401 = vset.pattern.permute.xlu2 %v1600_v42  ;;  %v1610_v42 = vmov 20  }
  0xb5   : > { %v383_v56 = vadd.f32 %v381_v50, %v373_v48  ;;  %v384_v57 = vadd.f32 %v382_v51, %v374_v49  ;;  %v1607_v51 = vmov 23  }
  0xb6   : > { %v429_v21 = vpop.permute.xlu0 %428 }
  0xb7   : > { %v393_v61 = vadd.f32 %v391_v52, %v383_v56  ;;  %v394_v62 = vadd.f32 %v392_v53, %v384_v57  ;;  %v1608_v56 = vmov 18  }
  0xb8   : > { %v407_v7 = vpop.permute.xlu1 %406 }
  0xb9   : > { %v411_v11 = vmul.f32 %v409_v54, %v407_v7  ;;  %v412_v12 = vmul.f32 %v410_v55, %v407_v7  ;;  %v403_v13 = vadd.f32 %v401_v63, %v393_v61  ;;  %v404_v14 = vadd.f32 %v402_v3, %v394_v62  ;;  %v1858_v40 = vpop.permute.xlu2 %766  ;;  %v1905_v54 = vld [vmem:[%s2138_s6] sm:$0xff] }
  0xba   : > { %1406 = vset.pattern.permute.xlu1 %v1597_v39  ;;  %v446_v55 = vlaneseq  ;;  %v453_v61 = vperm.slane %v451_v59, 0  ;;  %v454_v62 = vperm.slane %v451_v59, 1  ;;  %v478_v63 = vperm.slane %v476_v60, 0 }
  0xbb   : > { %v413_v18 = vadd.f32 %v411_v11, %v403_v13  ;;  %v414_v17 = vadd.f32 %v412_v12, %v404_v14  ;;  %v479_v3 = vperm.slane %v476_v60, 1  ;;  %v1609_v7 = vmov 19  }
  0xbc   : > { %v1912_v58 = vand.u32 127, %v446_v55  ;;  %v524_v55 = vld [vmem:[#allocation5 + $0x3] ss:$8 sm:$0x3] }
  0xbd   : > { %v423_v19 = vadd.f32 %v421_v15, %v413_v18  ;;  %v424_v20 = vadd.f32 %v422_v16, %v414_v17  ;;  %v526_v60 = vperm.slane %v524_v55, 0 }
  0xbe   : > { %vm448_vm0 = vcmp.lt.s32.totalorder %v1912_v58, 34  ;;  %vm472_vm1 = vcmp.lt.s32.totalorder %v1912_v58, 33  ;;  %vm496_vm2 = vcmp.lt.s32.totalorder %v1912_v58, 32  ;;  %vm520_vm3 = vcmp.lt.s32.totalorder %v1912_v58, 31 }
  0xbf   : > { %v431_v24 = vadd.f32 %v429_v21, %v423_v19  ;;  %v432_v22 = vadd.f32 %v429_v21, %v424_v20  ;;  %vm544_vm4 = vcmp.lt.s32.totalorder %v1912_v58, 30  ;;  %vm568_vm5 = vcmp.lt.s32.totalorder %v1912_v58, 18 }
  0xc0   : > { %vm592_vm6 = vcmp.lt.s32.totalorder %v1912_v58, 17  ;;  %vm616_vm7 = vcmp.lt.s32.totalorder %v1912_v58, 16  ;;  %vm640_vm8 = vcmp.lt.s32.totalorder %v1912_v58, 15  ;;  %vm664_vm9 = vcmp.lt.s32.totalorder %v1912_v58, 14 }
  0xc1   : > { %v433_v23 = vmul.f32 0.5, %v431_v24  ;;  %v434_v25 = vmul.f32 0.5, %v432_v22  ;;  %v1813_v26 = vpop.permute.xlu1 %461  ;;  %v1866_v43 = vpop.permute.xlu2 %790  ;;  %vm688_vm10 = vcmp.lt.s32.totalorder %v1912_v58, 2  ;;  %vm712_vm11 = vcmp.lt.s32.totalorder %v1912_v58, 1 }
  0xc2   : > { %vm753_vm12 = vcmp.lt.s32.totalorder %v1912_v58, 127  ;;  %vm777_vm13 = vcmp.lt.s32.totalorder %v1912_v58, 126  ;;  %vm801_vm14 = vcmp.lt.s32.totalorder %v1912_v58, 114  ;;  %vm825_vm15 = vcmp.lt.s32.totalorder %v1912_v58, 113 }
  0xc3   : > { %1419 = vtanh.f32 %v433_v23 }
  0xc4   : > { %1421 = vtanh.f32 %v434_v25 }
  0xc9   : > { %v1420_v27 = vpop.eup %1419  ;;  %v1874_v45 = vpop.permute.xlu2 %814 }
  0xca   : > { %v1422_v28 = vpop.eup %1421  ;;  %v437_v29 = vadd.f32 1.0, %v1420_v27  ;;  %v1822_v33 = vpop.permute.xlu1 %485 }
  0xcb   : > { %v438_v30 = vadd.f32 1.0, %v1422_v28 }
  0xcc   : > { %v1815_v31 = vmul.f32 %v437_v29, %v433_v23  ;;  %v500_v23 = vld [vmem:[#allocation5 + $0x2] ss:$8 sm:$0x3] }
  0xcd   : > { %v1817_v32 = vmul.f32 %v438_v30, %v434_v25  ;;  %v502_v29 = vperm.slane %v500_v23, 0  ;;  %v503_v30 = vperm.slane %v500_v23, 1 }
  0xce   : > { %442 = vrot.lane.b32.xlu1 %v1815_v31, %s1583_s21 }
  0xcf   : > { %470 = vrot.lane.b32.xlu0 %v1817_v32, %s1584_s11  ;;  %444 = vrot.lane.b32.xlu2 %v1817_v32, %s1583_s21  ;;  %s1596_s21 = smov 16  }
  0xd1   : > { %v1886_v47 = vpop.permute.xlu2 %838 }
  0xd3   : > { %v1828_v34 = vpop.permute.xlu1 %509 }
  0xd6   : > { %751 = vrot.lane.b32.xlu1 %v1817_v32, %s1585_s9 }
  0xd7   : > { %494 = vrot.lane.b32.xlu0 %v1817_v32, %s1586_s14  ;;  %468 = vrot.lane.b32.xlu2 %v1815_v31, %s1584_s11  ;;  %s1598_s11 = smov 110  }
  0xdc   : > { %v1836_v35 = vpop.permute.xlu1 %533 }
  0xde   : > { %775 = vrot.lane.b32.xlu1 %v1817_v32, %s1587_s15 }
  0xdf   : > { %518 = vrot.lane.b32.xlu0 %v1817_v32, %s1588_s10  ;;  %492 = vrot.lane.b32.xlu2 %v1815_v31, %s1586_s14  ;;  %s1599_s14 = smov 15  }
  0xe5   : > { %v1844_v36 = vpop.permute.xlu1 %557 }
  0xe6   : > { %799 = vrot.lane.b32.xlu1 %v1817_v32, %s1589_s5 }
  0xe7   : > { %542 = vrot.lane.b32.xlu0 %v1817_v32, %s1590_s13  ;;  %516 = vrot.lane.b32.xlu2 %v1815_v31, %s1588_s10  ;;  %s1601_s10 = smov 98  }
  0xee   : > { %823 = vrot.lane.b32.xlu1 %v1817_v32, %s1591_s22  ;;  %v1852_v38 = vpop.permute.xlu1 %581 }
  0xef   : > { %566 = vrot.lane.b32.xlu0 %v1817_v32, %s1592_s23  ;;  %540 = vrot.lane.b32.xlu2 %v1815_v31, %s1590_s13  ;;  %s1602_s13 = smov 14  }
  0xf6   : > { %847 = vrot.lane.b32.xlu1 %v1817_v32, %s1593_s16 }
  0xf7   : > { %590 = vrot.lane.b32.xlu0 %v1817_v32, %s1594_s20  ;;  %564 = vrot.lane.b32.xlu2 %v1815_v31, %s1592_s23  ;;  %v1860_v41 = vpop.permute.xlu1 %605  ;;  %s1603_s23 = smov 97  }
  0xfe   : > { %871 = vrot.lane.b32.xlu1 %v1817_v32, %s1595_s18 }
  0xff   : > { %614 = vrot.lane.b32.xlu0 %v1817_v32, %s1596_s21  ;;  %588 = vrot.lane.b32.xlu2 %v1815_v31, %s1594_s20  ;;  %s1604_s20 = smov 2  }
 0x100   : > { %v1870_v44 = vpop.permute.xlu1 %629 }
 0x106   : > { %895 = vrot.lane.b32.xlu1 %v1817_v32, %s1598_s11 }
 0x107   : > { %638 = vrot.lane.b32.xlu0 %v1817_v32, %s1599_s14  ;;  %612 = vrot.lane.b32.xlu2 %v1815_v31, %s1596_s21  ;;  %s1605_s21 = smov 96  }
 0x109   : > { %v1880_v46 = vpop.permute.xlu1 %653 }
 0x10e   : > { %919 = vrot.lane.b32.xlu1 %v1817_v32, %s1601_s10 }
 0x10f   : > { %662 = vrot.lane.b32.xlu0 %v1817_v32, %s1602_s13  ;;  %636 = vrot.lane.b32.xlu2 %v1815_v31, %s1599_s14 }
 0x112   : > { %v1888_v48 = vpop.permute.xlu1 %677 }
 0x116   : > { %943 = vrot.lane.b32.xlu1 %v1817_v32, %s1603_s23 }
 0x117   : > { %686 = vrot.lane.b32.xlu0 %v1817_v32, %s1604_s20  ;;  %660 = vrot.lane.b32.xlu2 %v1815_v31, %s1602_s13 }
 0x11b   : > { %v1894_v50 = vpop.permute.xlu1 %701 }
 0x11e   : > { %967 = vrot.lane.b32.xlu1 %v1817_v32, %s1605_s21 }
 0x11f   : > { %710 = vrot.lane.b32.xlu0 %v1817_v32, %s1606_s17  ;;  %684 = vrot.lane.b32.xlu2 %v1815_v31, %s1604_s20  ;;  %s2150_s20 = sshll.u32 %s1751_s25, 4 }
 0x124   : > { %v1900_v53 = vpop.permute.xlu1 %725 }
 0x126   : > { %982 = vperm.xlu1 %1406, %v1784_v10  }
 0x127   : > { %749 = vrot.lane.b32.xlu0 %v1815_v31, %s1585_s9  ;;  %708 = vrot.lane.b32.xlu2 %v1815_v31, %s1606_s17  ;;  %s1612_s17 = smov 95   ;;  %s1614_s9 = smov 94  }
 0x129   : > { %v445_v49 = vpop.permute.xlu2 %444 }
 0x12e   : > { %1407 = vset.pattern.permute.xlu1 %v1607_v51 }
 0x12f   : > { %773 = vrot.lane.b32.xlu0 %v1815_v31, %s1587_s15  ;;  %862 = vperm.xlu2 %1401, %v1784_v10  }
 0x130   : > { %1006 = vperm.xlu1 %1407, %v1784_v10  }
 0x131   : > { %v469_v52 = vpop.permute.xlu2 %468 }
 0x137   : > { %797 = vrot.lane.b32.xlu0 %v1815_v31, %s1589_s5  ;;  %1402 = vset.pattern.permute.xlu2 %v1608_v56 }
 0x138   : > { %886 = vperm.xlu2 %1402, %v1784_v10   ;;  %1409 = vset.pattern.permute.xlu1 %v1569_v4 }
 0x139   : > { %v493_v57 = vpop.permute.xlu2 %492  ;;  %1056 = vperm.xlu1 %1409, %v1905_v54  }
 0x13f   : > { %821 = vrot.lane.b32.xlu0 %v1815_v31, %s1591_s22  ;;  %s1511_s22 = scalar_lea.hbm %s2140_s8, 32 }
 0x140   : > { %1403 = vset.pattern.permute.xlu2 %v1609_v7  ;;  %v443_v11 = vpop.permute.xlu1 %442  ;;  %v1611_v7 = vmov 21  }
 0x141   : > { %v471_v12 = vpop.permute.xlu0 %470  ;;  %910 = vperm.xlu2 %1403, %v1784_v10   ;;  %v517_v13 = vpop.permute.xlu2 %516  ;;  %1412 = vset.pattern.permute.xlu1 %v1570_v5  ;;  %v449_v14 = vsel %vm448_vm0, %v443_v11, %v445_v49  ;;  %v450_v15 = vsel %vm448_vm0, %v445_v49, %v443_v11  ;;  %vm849_vm0 = vcmp.lt.s32.totalorder %v1912_v58, 112 }
 0x142   : > { %v473_v16 = vsel %vm472_vm1, %v469_v52, %v471_v12  ;;  %v474_v18 = vsel %vm472_vm1, %v471_v12, %v469_v52  ;;  %v457_v17 = vmul.f32 %v453_v61, %v450_v15  ;;  %v458_v19 = vmul.f32 %v454_v62, %v449_v14  ;;  %1086 = vperm.xlu1 %1412, %v1905_v54  }
 0x143   : > { %v482_v20 = vmul.f32 %v478_v63, %v474_v18  ;;  %v483_v21 = vmul.f32 %v479_v3, %v473_v16  ;;  %vm873_vm1 = vcmp.lt.s32.totalorder %v1912_v58, 111 }
 0x144   : > { %v464_v24 = vmul.f32 %v1813_v26, %v457_v17  ;;  %v465_v22 = vmul.f32 %v1813_v26, %v458_v19 }
 0x145   : > { %v488_v25 = vmul.f32 %v1822_v33, %v482_v20  ;;  %v489_v27 = vmul.f32 %v1822_v33, %v483_v21 }
 0x147   : > { %v490_v5 = vadd.f32 %v488_v25, %v464_v24  ;;  %v491_v28 = vadd.f32 %v489_v27, %v465_v22  ;;  %845 = vrot.lane.b32.xlu0 %v1815_v31, %s1593_s16  ;;  %v1613_v25 = vmov 24  }
 0x149   : > { %v495_v39 = vpop.permute.xlu0 %494  ;;  %1404 = vset.pattern.permute.xlu2 %v1610_v42  ;;  %v541_v52 = vpop.permute.xlu2 %540 }
 0x14a   : > { %v497_v49 = vsel %vm496_vm2, %v493_v57, %v495_v39  ;;  %v498_v51 = vsel %vm496_vm2, %v495_v39, %v493_v57  ;;  %934 = vperm.xlu2 %1404, %v1784_v10   ;;  %1414 = vset.pattern.permute.xlu1 %v1571_v6  ;;  %v527_v57 = vperm.slane %v524_v55, 1  ;;  %vm897_vm2 = vcmp.lt.s32.totalorder %v1912_v58, 110 }
 0x14b   : > { %v506_v26 = vmul.f32 %v502_v29, %v498_v51  ;;  %v507_v33 = vmul.f32 %v503_v30, %v497_v49  ;;  %1106 = vperm.xlu1 %1414, %v1905_v54  }
 0x14d   : > { %v512_v56 = vmul.f32 %v1828_v34, %v506_v26  ;;  %v513_v59 = vmul.f32 %v1828_v34, %v507_v33  ;;  %v548_v34 = vld [vmem:[#allocation5 + $0x4] ss:$8 sm:$0x3] }
 0x14e   : > { %v551_v19 = vperm.slane %v548_v34, 1 }
 0x14f   : > { %v514_v61 = vadd.f32 %v512_v56, %v490_v5  ;;  %v515_v62 = vadd.f32 %v513_v59, %v491_v28  ;;  %869 = vrot.lane.b32.xlu0 %v1815_v31, %s1595_s18  ;;  %s1267_s18 = sshll.u32 %s1684_s12, 4  ;;  %s1154_s12 = scalar_lea.sflag [#allocation4], %s1751_s25 }
 0x151   : > { %v519_v6 = vpop.permute.xlu0 %518  ;;  %v565_v16 = vpop.permute.xlu2 %564 }
 0x152   : > { %v521_v63 = vsel %vm520_vm3, %v517_v13, %v519_v6  ;;  %v522_v3 = vsel %vm520_vm3, %v519_v6, %v517_v13  ;;  %1405 = vset.pattern.permute.xlu2 %v1611_v7  ;;  %v550_v13 = vperm.slane %v548_v34, 0  ;;  %vm921_vm3 = vcmp.lt.s32.totalorder %v1912_v58, 98 }
 0x153   : > { %v530_v11 = vmul.f32 %v526_v60, %v522_v3  ;;  %v531_v12 = vmul.f32 %v527_v57, %v521_v63  ;;  %958 = vperm.xlu2 %1405, %v1784_v10   ;;  %1417 = vset.pattern.permute.xlu1 %v1569_v4 }
 0x155   : > { %v536_v14 = vmul.f32 %v1836_v35, %v530_v11  ;;  %v537_v15 = vmul.f32 %v1836_v35, %v531_v12  ;;  %v572_v35 = vld [vmem:[#allocation5 + $0x5] ss:$8 sm:$0x3]  ;;  %v620_v12 = vld [vmem:[#allocation5 + $0x7] ss:$8 sm:$0x3] }
 0x156   : > { %v574_v39 = vperm.slane %v572_v35, 0  ;;  %v575_v42 = vperm.slane %v572_v35, 1 }
 0x157   : > { %v538_v18 = vadd.f32 %v536_v14, %v514_v61  ;;  %v539_v17 = vadd.f32 %v537_v15, %v515_v62  ;;  %893 = vrot.lane.b32.xlu0 %v1815_v31, %s1598_s11 }
 0x159   : > { %v543_v20 = vpop.permute.xlu0 %542  ;;  %v589_v30 = vpop.permute.xlu2 %588 }
 0x15a   : > { %v545_v21 = vsel %vm544_vm4, %v541_v52, %v543_v20  ;;  %v546_v24 = vsel %vm544_vm4, %v543_v20, %v541_v52  ;;  %vm945_vm4 = vcmp.lt.s32.totalorder %v1912_v58, 97 }
 0x15b   : > { %v554_v22 = vmul.f32 %v550_v13, %v546_v24  ;;  %v555_v23 = vmul.f32 %v551_v19, %v545_v21  ;;  %989 = vrot.lane.b32.xlu2 %v1815_v31, %s1612_s17 }
 0x15c   : > { %1408 = vset.pattern.permute.xlu2 %v1613_v25 }
 0x15d   : > { %v560_v27 = vmul.f32 %v1844_v36, %v554_v22  ;;  %v561_v5 = vmul.f32 %v1844_v36, %v555_v23  ;;  %v596_v36 = vld [vmem:[#allocation5 + $0x6] ss:$8 sm:$0x3] }
 0x15e   : > { %v598_v61 = vperm.slane %v596_v36, 0  ;;  %v599_v62 = vperm.slane %v596_v36, 1  ;;  %v1977_v36 = vpop.permute.xlu1 %751 }
 0x15f   : > { %v562_v28 = vadd.f32 %v560_v27, %v538_v18  ;;  %v563_v29 = vadd.f32 %v561_v5, %v539_v17  ;;  %917 = vrot.lane.b32.xlu0 %v1815_v31, %s1601_s10  ;;  %v623_v18 = vperm.slane %v620_v12, 1 }
 0x161   : > { %v567_v49 = vpop.permute.xlu0 %566  ;;  %v613_v57 = vpop.permute.xlu2 %612 }
 0x162   : > { %v569_v51 = vsel %vm568_vm5, %v565_v16, %v567_v49  ;;  %v570_v26 = vsel %vm568_vm5, %v567_v49, %v565_v16  ;;  %v622_v16 = vperm.slane %v620_v12, 0  ;;  %vm969_vm5 = vcmp.lt.s32.totalorder %v1912_v58, 96 }
 0x163   : > { %v578_v33 = vmul.f32 %v574_v39, %v570_v26  ;;  %v579_v52 = vmul.f32 %v575_v42, %v569_v51  ;;  %1013 = vrot.lane.b32.xlu2 %v1815_v31, %s1614_s9  ;;  %v668_v39 = vld [vmem:[#allocation5 + $0x11] ss:$8 sm:$0x3] }
 0x165   : > { %v584_v55 = vmul.f32 %v1852_v38, %v578_v33  ;;  %v585_v56 = vmul.f32 %v1852_v38, %v579_v52  ;;  %v670_v33 = vperm.slane %v668_v39, 0  ;;  %v671_v52 = vperm.slane %v668_v39, 1 }
 0x167   : > { %v586_v59 = vadd.f32 %v584_v55, %v562_v28  ;;  %v587_v60 = vadd.f32 %v585_v56, %v563_v29  ;;  %941 = vrot.lane.b32.xlu0 %v1815_v31, %s1603_s23  ;;  %s1165_s23 = scalar_lea.hbm %s2140_s8, %s1267_s18 }
 0x168   : > { %s1169_s13 = sshll.u32 %s1165_s23, 4  ;;  %s1170_s13 = int_to_ptr.hbm [resolvable:$true] %s1169_s13 }
 0x169   : > { %v591_v6 = vpop.permute.xlu0 %590  ;;  %v637_v20 = vpop.permute.xlu2 %636 }
 0x16a   : > { %v593_v63 = vsel %vm592_vm6, %v589_v30, %v591_v6  ;;  %v594_v3 = vsel %vm592_vm6, %v591_v6, %v589_v30  ;;  %vm993_vm6 = vcmp.lt.s32.totalorder %v1912_v58, 95 }
 0x16b   : > { %v602_v7 = vmul.f32 %v598_v61, %v594_v3  ;;  %v603_v11 = vmul.f32 %v599_v62, %v593_v63  ;;  %1030 = vperm.xlu2 %1408, %v1784_v10   ;;  %v1037_v61 = vld [vmem:[%s2136_s4] sm:$0xf]  ;;  %v692_v62 = vld [vmem:[#allocation5 + $0x12] ss:$8 sm:$0x3] }
 0x16c   : > { %v695_v12 = vperm.slane %v692_v62, 1 }
 0x16d   : > { %v608_v38 = vmul.f32 %v1860_v41, %v602_v7  ;;  %v609_v34 = vmul.f32 %v1860_v41, %v603_v11  ;;  %v644_v41 = vld [vmem:[#allocation5 + $0x10] ss:$8 sm:$0x3]  ;;  %v694_v11 = vperm.slane %v692_v62, 0 }
 0x16e   : > { %v646_v25 = vperm.slane %v644_v41, 0  ;;  %v647_v27 = vperm.slane %v644_v41, 1 }
 0x16f   : > { %v610_v14 = vadd.f32 %v608_v38, %v586_v59  ;;  %v611_v15 = vadd.f32 %v609_v34, %v587_v60  ;;  %965 = vrot.lane.b32.xlu0 %v1815_v31, %s1605_s21  ;;  %s340_s21 = scalar_lea.vmem [#allocation7], %s2150_s20 }
 0x170   : > { %s1167_s14 = sshll.u32 %s340_s21, 4  ;;  %s1168_s14 = int_to_ptr.vmem [resolvable:$true] %s1167_s14 }
 0x171   : > { %v615_v17 = vpop.permute.xlu0 %614  ;;  %v661_v42 = vpop.permute.xlu2 %660 }
 0x172   : > { %v617_v13 = vsel %vm616_vm7, %v613_v57, %v615_v17  ;;  %v618_v19 = vsel %vm616_vm7, %v615_v17, %v613_v57  ;;  %v716_v17 = vld [vmem:[#allocation5 + $0x13] ss:$8 sm:$0x3]  ;;  %vm1017_vm7 = vcmp.lt.s32.totalorder %v1912_v58, 94 }
 0x173   : > { %v626_v21 = vmul.f32 %v622_v16, %v618_v19  ;;  %v627_v10 = vmul.f32 %v623_v18, %v617_v13  ;;  %1410 = vset.pattern.permute.xlu2 %v1566_v0  ;;  %v1990_v16 = vpop.permute.xlu1 %775  ;;  %v718_v41 = vperm.slane %v716_v17, 0 }
 0x174   : > { %1066 = vperm.xlu2 %1410, %v1905_v54  }
 0x175   : > { %v632_v24 = vmul.f32 %v1870_v44, %v626_v21  ;;  %v633_v22 = vmul.f32 %v1870_v44, %v627_v10 }
 0x177   : > { %v634_v23 = vadd.f32 %v632_v24, %v610_v14  ;;  %v635_v35 = vadd.f32 %v633_v22, %v611_v15  ;;  %991 = vrot.lane.b32.xlu0 %v1817_v32, %s1612_s17  ;;  %v733_v15 = vld [vmem:[#allocation5 + $0x14] ss:$8 sm:$0x3]  ;;  %v719_v24 = vperm.slane %v716_v17, 1  ;;  %s1505_s17 = sshra.s32 %s1170_s13, 4  ;;  %s1506_s17 = int_to_ptr.hbm [resolvable:$true] %s1505_s17 }
 0x178   : > { %v735_v19 = vperm.slane %v733_v15, 0  ;;  %p1512_p12 = scmp.lt.s32.totalorder %s1506_s17, %s2140_s8 }
 0x179   : > { %v639_v5 = vpop.permute.xlu0 %638  ;;  %v685_v63 = vpop.permute.xlu2 %684 }
 0x17a   : > { %v641_v28 = vsel %vm640_vm8, %v637_v20, %v639_v5  ;;  %v642_v29 = vsel %vm640_vm8, %v639_v5, %v637_v20  ;;  %v736_v20 = vperm.slane %v733_v15, 1 }
 0x17b   : > { %v650_v0 = vmul.f32 %v646_v25, %v642_v29  ;;  %v651_v30 = vmul.f32 %v647_v27, %v641_v28  ;;  %v757_v29 = vld [vmem:[#allocation5 + $0x15] ss:$8 sm:$0x3] }
 0x17c   : > { %1413 = vset.pattern.permute.xlu2 %v1568_v2  ;;  %v1135_v2 = vld [vmem:[%s2139_s7] sm:$0xff]  ;;  %v740_v25 = vmul.f32 %v736_v20, %v1817_v32 }
 0x17d   : > { %v656_v44 = vmul.f32 %v1880_v46, %v650_v0  ;;  %v657_v49 = vmul.f32 %v1880_v46, %v651_v30  ;;  %1096 = vperm.xlu2 %1413, %v1905_v54   ;;  %1138 = vperm.xlu1 %1417, %v1135_v2   ;;  %v800_v0 = vpop.permute.xlu1 %799 }
 0x17f   : > { %v658_v51 = vadd.f32 %v656_v44, %v634_v23  ;;  %v659_v26 = vadd.f32 %v657_v49, %v635_v35  ;;  %1015 = vrot.lane.b32.xlu0 %v1817_v32, %s1614_s9  ;;  %v739_v35 = vmul.f32 %v735_v19, %v1815_v31  ;;  %s1507_s9 = scalar_lea.hbm %s1506_s17, 16 }
 0x180   : > { %p1508_p1 = scmp.ne.s32.totalorder %s1506_s17, %s1507_s9  ;;  %p1513_p8 = scmp.lt.s32.totalorder %s1511_s22, %s1507_s9 }
 0x181   : > { %v663_v55 = vpop.permute.xlu0 %662  ;;  %v709_v22 = vpop.permute.xlu2 %708  ;;  %v745_v39 = vmul.f32 %v1850_v37, %v739_v35 }
 0x182   : > { %v665_v56 = vsel %vm664_vm9, %v661_v42, %v663_v55  ;;  %v666_v46 = vsel %vm664_vm9, %v663_v55, %v661_v42  ;;  %v746_v42 = vmul.f32 %v1850_v37, %v740_v25  ;;  %p1509_p3 = pnand %p1508_p1, %p1720_p13  ;;  %p1514_p7 = por %p1513_p8, %p1512_p12 }
 0x183   : > { %v674_v59 = vmul.f32 %v670_v33, %v666_v46  ;;  %v675_v60 = vmul.f32 %v671_v52, %v665_v56 }
 0x184   : > { %p1510_p5 = pneg %p1509_p3 }
 0x185   : > { %v680_v57 = vmul.f32 %v1888_v48, %v674_v59  ;;  %v681_v6 = vmul.f32 %v1888_v48, %v675_v60  ;;  %1415 = vset.pattern.permute.xlu2 %v1572_v8  ;;  %v824_v60 = vpop.permute.xlu1 %823 }
 0x186   : > { %1116 = vperm.xlu2 %1415, %v1905_v54   ;;  %p1515_p9 = pnand %p1514_p7, %p1510_p5 }
 0x187   : > { %v682_v3 = vadd.f32 %v680_v57, %v658_v51  ;;  %v683_v7 = vadd.f32 %v681_v6, %v659_v26  ;;  %1040 = vperm.xlu0 %1377, %v1037_v61   ;;  %v759_v51 = vperm.slane %v757_v29, 0  ;;  %v760_v26 = vperm.slane %v757_v29, 1 }
 0x189   : > { %v687_v38 = vpop.permute.xlu0 %686  ;;  %v2013_v6 = vpop.permute.xlu2 %862 }
 0x18a   : > { %v689_v34 = vsel %vm688_vm10, %v685_v63, %v687_v38  ;;  %v690_v14 = vsel %vm688_vm10, %v687_v38, %v685_v63 }
 0x18b   : > { %v698_v18 = vmul.f32 %v694_v11, %v690_v14  ;;  %v699_v48 = vmul.f32 %v695_v12, %v689_v34  ;;  %v781_v14 = vld [vmem:[#allocation5 + $0x16] ss:$8 sm:$0x3] }
 0x18d   : > { %v704_v8 = vmul.f32 %v1894_v50, %v698_v18  ;;  %v705_v13 = vmul.f32 %v1894_v50, %v699_v48  ;;  %v783_v18 = vperm.slane %v781_v14, 0  ;;  %v805_v48 = vld [vmem:[#allocation5 + $0x17] ss:$8 sm:$0x3] }
 0x18f   : > { %v706_v21 = vadd.f32 %v704_v8, %v682_v3  ;;  %v707_v10 = vadd.f32 %v705_v13, %v683_v7  ;;  %1411 = vset.pattern.permute.xlu0 %v1567_v1  ;;  %v784_v8 = vperm.slane %v781_v14, 1 }
 0x190   : > { %1076 = vperm.xlu0 %1411, %v1905_v54  }
 0x191   : > { %v711_v23 = vpop.permute.xlu0 %710 }
 0x192   : > { %v713_v27 = vsel %vm712_vm11, %v709_v22, %v711_v23  ;;  %v714_v50 = vsel %vm712_vm11, %v711_v23, %v709_v22 }
 0x193   : > { %v722_v5 = vmul.f32 %v718_v41, %v714_v50  ;;  %v723_v28 = vmul.f32 %v719_v24, %v713_v27  ;;  %v808_v41 = vperm.slane %v805_v48, 1  ;;  %v853_v27 = vld [vmem:[#allocation5 + $0x21] ss:$8 sm:$0x3] }
 0x195   : > { %v728_v30 = vmul.f32 %v1900_v53, %v722_v5  ;;  %v729_v1 = vmul.f32 %v1900_v53, %v723_v28 }
 0x197   : > { %v730_v44 = vadd.f32 %v728_v30, %v706_v21  ;;  %v731_v49 = vadd.f32 %v729_v1, %v707_v10  ;;  %v829_v21 = vld [vmem:[#allocation5 + $0x20] ss:$8 sm:$0x3]  ;;  %v807_v10 = vperm.slane %v805_v48, 0  ;;  %v855_v1 = vperm.slane %v853_v27, 0 }
 0x198   : > { %1416 = vset.pattern.permute.xlu0 %v1573_v9  ;;  %v831_v25 = vperm.slane %v829_v21, 0  ;;  %v832_v50 = vperm.slane %v829_v21, 1 }
 0x199   : > { %1126 = vperm.xlu0 %1416, %v1905_v54   ;;  %v750_v33 = vpop.permute.xlu0 %749  ;;  %v747_v52 = vadd.f32 %v745_v39, %v730_v44  ;;  %v748_v55 = vadd.f32 %v746_v42, %v731_v49  ;;  %v848_v54 = vpop.permute.xlu1 %847  ;;  %v856_v39 = vperm.slane %v853_v27, 1  ;;  %v877_v42 = vld [vmem:[#allocation5 + $0x22] ss:$8 sm:$0x3] }
 0x19a   : > { %v754_v2 = vsel %vm753_vm12, %v750_v33, %v1977_v36  ;;  %v755_v53 = vsel %vm753_vm12, %v1977_v36, %v750_v33  ;;  %v2017_v36 = vpop.permute.xlu2 %886 }
 0x19b   : > { %v763_v56 = vmul.f32 %v759_v51, %v754_v2  ;;  %v764_v46 = vmul.f32 %v760_v26, %v755_v53 }
 0x19d   : > { %v769_v37 = vmul.f32 %v1858_v40, %v763_v56  ;;  %v770_v59 = vmul.f32 %v1858_v40, %v764_v46  ;;  %v879_v46 = vperm.slane %v877_v42, 0 }
 0x19f   : > { %v771_v61 = vadd.f32 %v769_v37, %v747_v52  ;;  %v2010_v62 = vadd.f32 %v770_v59, %v748_v55  ;;  %v901_v55 = vld [vmem:[#allocation5 + $0x23] ss:$8 sm:$0x3] }
 0x1a1   : > { %v774_v9 = vpop.permute.xlu0 %773  ;;  %1418 = vset.pattern.permute.xlu0 %v1569_v4  ;;  %v2015_v3 = vpop.permute.xlu1 %871 }
 0x1a2   : > { %v2021_v40 = vpop.permute.xlu2 %910  ;;  %v778_v13 = vsel %vm777_vm13, %v774_v9, %v1990_v16  ;;  %v779_v20 = vsel %vm777_vm13, %v1990_v16, %v774_v9  ;;  %v925_v9 = vld [vmem:[#allocation5 + $0x24] ss:$8 sm:$0x3] }
 0x1a3   : > { %v787_v24 = vmul.f32 %v783_v18, %v778_v13  ;;  %v788_v35 = vmul.f32 %v784_v8, %v779_v20  ;;  %v904_v18 = vperm.slane %v901_v55, 1  ;;  %v927_v8 = vperm.slane %v925_v9, 0  ;;  %v949_v13 = vld [vmem:[#allocation5 + $0x25] ss:$8 sm:$0x3] }
 0x1a4   : > { %v952_v27 = vperm.slane %v949_v13, 1 }
 0x1a5   : > { %v793_v16 = vmul.f32 %v1866_v43, %v787_v24  ;;  %v794_v49 = vmul.f32 %v1866_v43, %v788_v35  ;;  %v880_v43 = vperm.slane %v877_v42, 1  ;;  %v928_v24 = vperm.slane %v925_v9, 1 }
 0x1a7   : > { %v795_v37 = vadd.f32 %v793_v16, %v771_v61 }
 0x1a9   : > { %v798_v57 = vpop.permute.xlu0 %797  ;;  %v2019_v11 = vpop.permute.xlu1 %895 }
 0x1aa   : > { %v2025_v34 = vpop.permute.xlu2 %934  ;;  %v802_v22 = vsel %vm801_vm14, %v798_v57, %v800_v0  ;;  %v803_v23 = vsel %vm801_vm14, %v800_v0, %v798_v57 }
 0x1ab   : > { %v811_v28 = vmul.f32 %v807_v10, %v802_v22  ;;  %v812_v29 = vmul.f32 %v808_v41, %v803_v23  ;;  %v973_v22 = vld [vmem:[#allocation5 + $0x26] ss:$8 sm:$0x3] }
 0x1ad   : > { %v817_v2 = vmul.f32 %v1874_v45, %v811_v28  ;;  %v818_v53 = vmul.f32 %v1874_v45, %v812_v29  ;;  %v975_v29 = vperm.slane %v973_v22, 0 }
 0x1af   : > { %v819_v48 = vadd.f32 %v817_v2, %v795_v37 }
 0x1b1   : > { %v822_v63 = vpop.permute.xlu0 %821  ;;  %v2023_v38 = vpop.permute.xlu1 %919 }
 0x1b2   : > { %v2036_v19 = vpop.permute.xlu2 %958  ;;  %v826_v5 = vsel %vm825_vm15, %v822_v63, %v824_v60  ;;  %v827_v30 = vsel %vm825_vm15, %v824_v60, %v822_v63  ;;  %v903_v63 = vperm.slane %v901_v55, 0 }
 0x1b3   : > { %v835_v51 = vmul.f32 %v831_v25, %v826_v5  ;;  %v836_v52 = vmul.f32 %v832_v50, %v827_v30  ;;  %v951_v25 = vperm.slane %v949_v13, 0 }
 0x1b5   : > { %v841_v57 = vmul.f32 %v1886_v47, %v835_v51 }
 0x1b7   : > { %v843_v41 = vadd.f32 %v841_v57, %v819_v48  ;;  %v1021_v57 = vld [vmem:[#allocation5 + $0x30] ss:$8 sm:$0x3] }
 0x1b9   : > { %v846_v7 = vpop.permute.xlu0 %845  ;;  %v2030_v15 = vpop.permute.xlu1 %943 }
 0x1ba   : > { %v850_v0 = vsel %vm849_vm0, %v846_v7, %v848_v54  ;;  %v851_v26 = vsel %vm849_vm0, %v848_v54, %v846_v7  ;;  %v2047_v56 = vpop.permute.xlu2 %989  ;;  %v796_v54 = vadd.f32 %v794_v49, %v2010_v62  ;;  %v842_v7 = vmul.f32 %v1886_v47, %v836_v52  ;;  %v997_v49 = vld [vmem:[#allocation5 + $0x27] ss:$8 sm:$0x3] }
 0x1bb   : > { %v859_v59 = vmul.f32 %v855_v1, %v850_v0  ;;  %v860_v60 = vmul.f32 %v856_v39, %v851_v26  ;;  %v976_v26 = vperm.slane %v973_v22, 1 }
 0x1bc   : > { %v820_v61 = vadd.f32 %v818_v53, %v796_v54  ;;  %v999_v53 = vperm.slane %v997_v49, 0 }
 0x1bd   : > { %v865_v62 = vmul.f32 %v2013_v6, %v859_v59  ;;  %v866_v20 = vmul.f32 %v2013_v6, %v860_v60 }
 0x1be   : > { %v844_v35 = vadd.f32 %v842_v7, %v820_v61  ;;  %v1023_v61 = vperm.slane %v1021_v57, 0 }
 0x1c0   : > { %v868_v28 = vadd.f32 %v866_v20, %v844_v35 }
 0x1c1   : > { %v870_v12 = vpop.permute.xlu0 %869  ;;  %v2043_v33 = vpop.permute.xlu1 %967 }
 0x1c2   : > { %v874_v45 = vsel %vm873_vm1, %v870_v12, %v2015_v3  ;;  %v875_v14 = vsel %vm873_vm1, %v2015_v3, %v870_v12  ;;  %v1014_v30 = vpop.permute.xlu2 %1013 }
 0x1c3   : > { %v883_v3 = vmul.f32 %v879_v46, %v874_v45  ;;  %v884_v12 = vmul.f32 %v880_v43, %v875_v14  ;;  %v1000_v46 = vperm.slane %v997_v49, 1  ;;  %v1059_v49 = vperm.slane %v1815_v31, 0 }
 0x1c5   : > { %v889_v16 = vmul.f32 %v2017_v36, %v883_v3  ;;  %v890_v1 = vmul.f32 %v2017_v36, %v884_v12 }
 0x1c9   : > { %v2027_v4 = vpop.permute.xlu0 %893  ;;  %v983_v23 = vpop.permute.xlu1 %982 }
 0x1ca   : > { %v898_v21 = vsel %vm897_vm2, %v2027_v4, %v2019_v11  ;;  %v899_v47 = vsel %vm897_vm2, %v2019_v11, %v2027_v4  ;;  %v867_v4 = vadd.f32 %v865_v62, %v843_v41  ;;  %v1031_v20 = vpop.permute.xlu2 %1030 }
 0x1cb   : > { %v907_v50 = vmul.f32 %v903_v63, %v898_v21  ;;  %v908_v6 = vmul.f32 %v904_v18, %v899_v47 }
 0x1d1   : > { %v2032_v17 = vpop.permute.xlu0 %917  ;;  %v1007_v7 = vpop.permute.xlu1 %1006 }
 0x1d2   : > { %v922_v5 = vsel %vm921_vm3, %v2032_v17, %v2023_v38  ;;  %v923_v11 = vsel %vm921_vm3, %v2023_v38, %v2032_v17  ;;  %v913_v38 = vmul.f32 %v2021_v40, %v907_v50  ;;  %v914_v17 = vmul.f32 %v2021_v40, %v908_v6 }
 0x1d3   : > { %v931_v51 = vmul.f32 %v927_v8, %v922_v5  ;;  %v932_v0 = vmul.f32 %v928_v24, %v923_v11 }
 0x1d5   : > { %v937_v43 = vmul.f32 %v2025_v34, %v931_v51  ;;  %v938_v9 = vmul.f32 %v2025_v34, %v932_v0 }
 0x1d9   : > { %v942_v44 = vpop.permute.xlu0 %941  ;;  %v1057_v5 = vpop.permute.xlu1 %1056 }
 0x1da   : > { %v946_v39 = vsel %vm945_vm4, %v942_v44, %v2030_v15  ;;  %v947_v42 = vsel %vm945_vm4, %v2030_v15, %v942_v44  ;;  %v891_v15 = vadd.f32 %v889_v16, %v867_v4  ;;  %v892_v44 = vadd.f32 %v890_v1, %v868_v28  ;;  %v1067_v28 = vpop.permute.xlu2 %1066 }
 0x1db   : > { %v955_v2 = vmul.f32 %v951_v25, %v946_v39  ;;  %v956_v36 = vmul.f32 %v952_v27, %v947_v42  ;;  %v1070_v42 = vperm.slane %v1817_v32, 1 }
 0x1dc   : > { %v915_v63 = vadd.f32 %v913_v38, %v891_v15  ;;  %v1060_v38 = vperm.slane %v1817_v32, 0 }
 0x1dd   : > { %v961_v45 = vmul.f32 %v2036_v19, %v955_v2  ;;  %v962_v14 = vmul.f32 %v2036_v19, %v956_v36  ;;  %v1061_v36 = vmul.f32 %v1059_v49, %v1057_v5 }
 0x1de   : > { %v939_v8 = vadd.f32 %v937_v43, %v915_v63  ;;  %v1090_v63 = vperm.slane %v1817_v32, 3 }
 0x1e0   : > { %v963_v21 = vadd.f32 %v961_v45, %v939_v8 }
 0x1e1   : > { %v966_v10 = vpop.permute.xlu0 %965  ;;  %v1087_v51 = vpop.permute.xlu1 %1086 }
 0x1e2   : > { %v970_v52 = vsel %vm969_vm5, %v966_v10, %v2043_v33  ;;  %v971_v55 = vsel %vm969_vm5, %v2043_v33, %v966_v10  ;;  %v916_v33 = vadd.f32 %v914_v17, %v892_v44  ;;  %v1072_v17 = vmul.f32 %v1070_v42, %v1067_v28  ;;  %v1097_v2 = vpop.permute.xlu2 %1096 }
 0x1e3   : > { %v979_v40 = vmul.f32 %v975_v29, %v970_v52  ;;  %v980_v54 = vmul.f32 %v976_v26, %v971_v55  ;;  %v1079_v26 = vperm.slane %v1815_v31, 2  ;;  %v1080_v52 = vperm.slane %v1817_v32, 2 }
 0x1e4   : > { %v940_v13 = vadd.f32 %v938_v9, %v916_v33 }
 0x1e5   : > { %v985_v62 = vmul.f32 %v983_v23, %v979_v40  ;;  %v986_v34 = vmul.f32 %v983_v23, %v980_v54  ;;  %v1089_v40 = vperm.slane %v1815_v31, 3 }
 0x1e6   : > { %v964_v47 = vadd.f32 %v962_v14, %v940_v13 }
 0x1e7   : > { %v987_v22 = vadd.f32 %v985_v62, %v963_v21  ;;  %v1091_v45 = vmul.f32 %v1089_v40, %v1087_v51 }
 0x1e8   : > { %v988_v19 = vadd.f32 %v986_v34, %v964_v47 }
 0x1e9   : > { %v992_v37 = vpop.permute.xlu0 %991  ;;  %v1107_v8 = vpop.permute.xlu1 %1106 }
 0x1ea   : > { %v994_v59 = vsel %vm993_vm6, %v2047_v56, %v992_v37  ;;  %v995_v60 = vsel %vm993_vm6, %v992_v37, %v2047_v56  ;;  %v1024_v56 = vperm.slane %v1021_v57, 1  ;;  %v1062_v37 = vmul.f32 %v1060_v38, %v1057_v5  ;;  %v1117_v47 = vpop.permute.xlu2 %1116 }
 0x1eb   : > { %v1003_v18 = vmul.f32 %v999_v53, %v994_v59  ;;  %v1004_v48 = vmul.f32 %v1000_v46, %v995_v60 }
 0x1ec   : > { %v1074_v43 = vadd.f32 %v1072_v17, %v1062_v37 }
 0x1ed   : > { %v1009_v10 = vmul.f32 %v1007_v7, %v1003_v18  ;;  %v1010_v41 = vmul.f32 %v1007_v7, %v1004_v48  ;;  %v1092_v48 = vmul.f32 %v1090_v63, %v1087_v51 }
 0x1ef   : > { %v1011_v50 = vadd.f32 %v1009_v10, %v987_v22  ;;  %v1012_v6 = vadd.f32 %v1010_v41, %v988_v19 }
 0x1f1   : > { %v1016_v3 = vpop.permute.xlu0 %1015 }
 0x1f2   : > { %v1018_v12 = vsel %vm1017_vm7, %v1014_v30, %v1016_v3  ;;  %v1019_v24 = vsel %vm1017_vm7, %v1016_v3, %v1014_v30  ;;  %v1069_v30 = vperm.slane %v1815_v31, 1 }
 0x1f3   : > { %v1027_v35 = vmul.f32 %v1023_v61, %v1018_v12  ;;  %v1028_v25 = vmul.f32 %v1024_v56, %v1019_v24 }
 0x1f4   : > { %v1071_v0 = vmul.f32 %v1069_v30, %v1067_v28 }
 0x1f5   : > { %v1033_v27 = vmul.f32 %v1031_v20, %v1027_v35  ;;  %v1034_v58 = vmul.f32 %v1031_v20, %v1028_v25 }
 0x1f6   : > { %v1073_v59 = vadd.f32 %v1071_v0, %v1061_v36 }
 0x1f7   : > { %v1035_v11 = vadd.f32 %v1033_v27, %v1011_v50  ;;  %v1036_v4 = vadd.f32 %v1034_v58, %v1012_v6 }
 0x1f9   : > { %v1041_v23 = vpop.permute.xlu0 %1040 }
 0x1fa   : > { %v1043_v29 = vadd.f32 %v1041_v23, %v1035_v11  ;;  %v1044_v16 = vadd.f32 %v1041_v23, %v1036_v4  ;;  %v1139_v11 = vpop.permute.xlu1 %1138 }
 0x1fc   : > { %v1045_v1 = vmul.f32 0.5, %v1043_v29  ;;  %v1046_v39 = vmul.f32 0.5, %v1044_v16 }
 0x1fe   : > { %1423 = vtanh.f32 %v1045_v1 }
 0x1ff   : > { %1425 = vtanh.f32 %v1046_v39 }
 0x202   : > { %v1077_v55 = vpop.permute.xlu0 %1076 }
 0x203   : > { %v1081_v53 = vmul.f32 %v1079_v26, %v1077_v55  ;;  %v1082_v15 = vmul.f32 %v1080_v52, %v1077_v55 }
 0x204   : > { %v1424_v46 = vpop.eup %1423 }
 0x205   : > { %v1426_v44 = vpop.eup %1425  ;;  %v1049_v60 = vadd.f32 1.0, %v1424_v46  ;;  %v1083_v57 = vadd.f32 %v1081_v53, %v1073_v59  ;;  %v1084_v7 = vadd.f32 %v1082_v15, %v1074_v43 }
 0x206   : > { %v1050_v9 = vadd.f32 1.0, %v1426_v44 }
 0x207   : > { %v1051_v54 = vmul.f32 %v1049_v60, %v1045_v1  ;;  %v1093_v13 = vadd.f32 %v1091_v45, %v1083_v57  ;;  %v1094_v20 = vadd.f32 %v1092_v48, %v1084_v7 }
 0x208   : > { %v1052_v33 = vmul.f32 %v1050_v9, %v1046_v39 }
 0x209   : > { %v1099_v14 = vperm.slane %v1051_v54, 0  ;;  %v1109_v18 = vperm.slane %v1051_v54, 1  ;;  %v1119_v34 = vperm.slane %v1051_v54, 2  ;;  %v1129_v3 = vperm.slane %v1051_v54, 3 }
 0x20a   : > { %v1100_v61 = vperm.slane %v1052_v33, 0  ;;  %v1110_v56 = vperm.slane %v1052_v33, 1  ;;  %v1120_v31 = vperm.slane %v1052_v33, 2  ;;  %v1130_v22 = vperm.slane %v1052_v33, 3 }
 0x20b   : > { %v1101_v62 = vmul.f32 %v1099_v14, %v1097_v2  ;;  %v1111_v41 = vmul.f32 %v1109_v18, %v1107_v8  ;;  %v1127_v24 = vpop.permute.xlu0 %1126  ;;  %v1121_v19 = vmul.f32 %v1119_v34, %v1117_v47 }
 0x20c   : > { %v1102_v21 = vmul.f32 %v1100_v61, %v1097_v2  ;;  %v1112_v12 = vmul.f32 %v1110_v56, %v1107_v8  ;;  %v1122_v25 = vmul.f32 %v1120_v31, %v1117_v47  ;;  %v1131_v58 = vmul.f32 %v1129_v3, %v1127_v24 }
 0x20d   : > { %v1103_v10 = vadd.f32 %v1101_v62, %v1093_v13  ;;  %v1132_v6 = vmul.f32 %v1130_v22, %v1127_v24 }
 0x20e   : > { %v1104_v32 = vadd.f32 %v1102_v21, %v1094_v20 }
 0x20f   : > { %v1113_v35 = vadd.f32 %v1111_v41, %v1103_v10 }
 0x210   : > { %v1114_v27 = vadd.f32 %v1112_v12, %v1104_v32 }
 0x211   : > { %v1123_v50 = vadd.f32 %v1121_v19, %v1113_v35 }
 0x212   : > { %v1124_v5 = vadd.f32 %v1122_v25, %v1114_v27 }
 0x213   : > { %v1133_v4 = vadd.f32 %v1131_v58, %v1123_v50 }
 0x214   : > { %v1134_v23 = vadd.f32 %v1132_v6, %v1124_v5 }
 0x215   : > { %v1141_v28 = vadd.f32 %v1139_v11, %v1133_v4 }
 0x216   : > { %v1142_v29 = vadd.f32 %v1139_v11, %v1134_v23 }
 0x217   : > { %v1143_v16 = vmul.f32 0.5, %v1141_v28 }
 0x218   : > { %v1144_v1 = vmul.f32 0.5, %v1142_v29 }
 0x219   : > { %1427 = vtanh.f32 %v1143_v16 }
 0x21a   : > { %1429 = vtanh.f32 %v1144_v1 }
 0x21f   : > { %v1428_v39 = vpop.eup %1427 }
 0x220   : > { %v1430_v30 = vpop.eup %1429  ;;  %v1147_v42 = vadd.f32 1.0, %v1428_v39 }
 0x221   : > { %v1148_v49 = vadd.f32 1.0, %v1430_v30 }
 0x222   : > { %v1149_v51 = vmul.f32 %v1147_v42, %v1143_v16 }
 0x223   : > { %v1150_v0 = vmul.f32 %v1148_v49, %v1144_v1 }
 0x224   : > { %1151 = vst [vmem:[%s340_s21] sm:$0xff] %v1149_v51 }
 0x225   : > { %1152 = vst [vmem:[%s340_s21 + $0x8] sm:$0xff] %v1150_v0 }
 0x226   : > { %1518 = shalt.err (!%p1515_p9)
}
 0x227   : > { %1274 = dma.vmem_to_hbm [thread:$0]  (%p1720_p13), %s1168_s14, 256, %s1170_s13, %s1154_s12  }
 0x228 PF: > { %s1181_s25 = sand.u32 1, %s1549_s27   ;;  %p2151_p10 = scmp.ge.s32.totalorder %s1561_s30, 2 }
 0x229   : > { %s1182_s11 = scalar_lea.sflag [#allocation4], %s1181_s25 }
 0x22a   : > { %p1285_p11 = pnand %p2151_p10, %p1725_p4 }
 0x22c   : > { %p1286_p0 = pneg %p1285_p11 }
 0x22e   : > { %1544 = dma.done.wait (%p1286_p0), %s1182_s11, 256  }
 0x22f   : > { %1546 = vsyncadd (%p1286_p0), %s1182_s11, 4294967040  ;;  %s2152_s10 = sld [smem:[#allocation11_spill]]  ;;  %p22_p2 = scmp.ge.s32.totalorder %s1700_s19, 4  }
 0x230   : > { %s2153_s27 = smov %s1553_s28  ;;  %s2154_s28 = smov %s1557_s29 }
 0x231   : > { %s2156_s30 = smov %s1700_s19  ;;  %24 = sbr.rel (!%p22_p2) target bundleno = 8 (0x8), region = 125 }
 0x235   : > { %s2155_s29 = smov %s2152_s10 }
 0x236   :  { %1188 = vsyncpa [#allocation3], 1 }
 0x237   :  { %1190 = vsyncpa [#allocation3 + $0x1], 1 }
 0x238   :  { %1191 = vsyncpa [#allocation6], 1 }
 0x239   :  { %1192 = vsyncpa [#allocation4], 1 }
 0x23a   :  { %1194 = vsyncpa [#allocation4 + $0x1], 1 }

</bundles_post_ra>
